<compile_context>
chip_gen: v6e
topology: v6e:2x2x1
jax: 0.10.0
libtpu: 0.0.40
codegen_flags: <defaults>
</compile_context>

<pallas_src>
import jax
import jax.numpy as jnp
from jax.experimental import pallas as pl
from jax.experimental.pallas import tpu as pltpu

# ----------------------------- configuration --------------------------------
IMAGE_SIZE = 16
PATCH_SIZE = 8
CHANNELS = 4
BATCH = 2
DIM = 32          # transformer width
DEPTH = 2
HEADS = 2
DIM_HEAD = 16
MLP_DIM = 64
NUM_CLASSES = 10

INNER = HEADS * DIM_HEAD                         # 32
SCALE = DIM_HEAD ** -0.5
NUM_PATCHES = (IMAGE_SIZE // PATCH_SIZE) ** 2    # 4
PATCH_DIM = CHANNELS * PATCH_SIZE * PATCH_SIZE   # 256
SEQ = NUM_PATCHES + 1                            # 5 (cls token)
SEQ_PAD = 8                                      # sublane-aligned per-batch rows
NTOK_PAD = BATCH * SEQ_PAD                       # 16 rows total
HN = HEADS * NTOK_PAD                            # 32 head-stacked rows
NC_PAD = 128                                     # lane-dense classifier width
EPS = 1e-5
_NEG_INF = -1e30

# ------------------------- vector-slab row layout ----------------------------
V_PE_LN1_G, V_PE_LN1_B, V_PE_B, V_PE_LN2_G, V_PE_LN2_B = 0, 1, 2, 3, 4
V_HEAD_LN_G, V_HEAD_LN_B, V_HEAD_B = 5, 6, 7
V_TOKBASE = 8                                    # 16 rows: cls+pos base (token layout)
V_PATCHMASK = V_TOKBASE + NTOK_PAD               # 24: 16 rows, 0/1 real-patch-row mask
V_ATTNBIAS = V_PATCHMASK + NTOK_PAD              # 40: 32 rows, additive attention bias
V_LAYER0 = V_ATTNBIAS + HN                       # 72
V_PER_LAYER = 8                                  # ln_g, ln_b, bo, ff ln_g, ff ln_b, b1, b2, pad
V_ROWS = V_LAYER0 + DEPTH * V_PER_LAYER          # 88 (multiple of 8)

# ------------------------- weight-slab row layout -----------------------------
L_WQKV = 0                                       # (DIM, 3*INNER) per-head [q|k|v] groups
L_WO = L_WQKV + DIM                              # 32: (DIM_HEAD, HEADS*DIM) lane-concat out proj
L_W1 = L_WO + DIM_HEAD                           # 48: (DIM, MLP_DIM)
L_W2 = L_W1 + DIM                                # 80: (MLP_DIM, DIM)
L_SIZE = L_W2 + MLP_DIM                          # 144 rows per layer
L_HEADW = DEPTH * L_SIZE                         # 288: (DIM, NC_PAD) classifier weight
WL_ROWS = L_HEADW + DIM                          # 320 (multiple of 8)


# --------------------------- shared math helpers -----------------------------
def _layernorm(x, g, b):
    # One-pass variance: the two cross-lane reductions (sum x, sum x^2) are
    # independent -> both XLUs can work in parallel; gain folded into rsqrt mul.
    mu = jnp.mean(x, axis=-1, keepdims=True)
    ms = jnp.mean(x * x, axis=-1, keepdims=True)
    inv = jax.lax.rsqrt(jnp.maximum(ms - mu * mu, 0.0) + EPS)
    return (x - mu) * (inv * g) + b


def _layernorm_ref(x, g, b):
    mu = jnp.mean(x, axis=-1, keepdims=True)
    var = jnp.mean(jnp.square(x - mu), axis=-1, keepdims=True)
    return (x - mu) * jax.lax.rsqrt(var + EPS) * g + b


def _gelu(x):
    # tanh-approximation GELU (EUP tanh).
    # TODO(synk): torch.nn.GELU() default is exact erf; tanh approx differs at ~1e-3 worst case.
    return 0.5 * x * (1.0 + jnp.tanh(0.7978845608028654 * (x + 0.044715 * x * x * x)))


# ------------------------------ fused Pallas kernel ---------------------------
def vit_kernel(xp_ref, vec_ref, wpe_ref, wl_ref, o_ref):
    f32 = jnp.float32

    # Constant blocks loaded once from the vector slab (all precomputed on host).
    token_base = vec_ref[V_TOKBASE:V_TOKBASE + NTOK_PAD, 0:DIM]     # cls+pos / pos / 0
    patch_mask = vec_ref[V_PATCHMASK:V_PATCHMASK + NTOK_PAD, 0:DIM]  # 1 at real patch rows
    attn_bias = vec_ref[V_ATTNBIAS:V_ATTNBIAS + HN, 0:HN]            # (head,batch) block-diag

    # ---- patch embedding: LN -> Linear -> LN on the 8-aligned padded row layout ----
    xp = xp_ref[...]                                                  # (NTOK_PAD, PATCH_DIM)
    h = _layernorm(xp, vec_ref[V_PE_LN1_G:V_PE_LN1_G + 1, :],
                   vec_ref[V_PE_LN1_B:V_PE_LN1_B + 1, :])
    h = jnp.dot(h, wpe_ref[...], preferred_element_type=f32) + vec_ref[V_PE_B:V_PE_B + 1, 0:DIM]
    h = _layernorm(h, vec_ref[V_PE_LN2_G:V_PE_LN2_G + 1, 0:DIM],
                   vec_ref[V_PE_LN2_B:V_PE_LN2_B + 1, 0:DIM])

    # ---- tokens assembled directly in vregs (no VMEM scratch round trip) ----
    x = h * patch_mask + token_base                                   # (NTOK_PAD, DIM)

    # ---- transformer layers (unrolled) ----
    for l in range(DEPTH):
        vr = V_LAYER0 + l * V_PER_LAYER
        wr = l * L_SIZE

        # Attention (spec module): LN -> fused QKV -> head-stacked MHSA -> out proj (+residual)
        xn = _layernorm(x, vec_ref[vr + 0:vr + 1, 0:DIM], vec_ref[vr + 1:vr + 2, 0:DIM])
        qkv = jnp.dot(xn, wl_ref[wr + L_WQKV:wr + L_WQKV + DIM, 0:3 * INNER],
                      preferred_element_type=f32)                     # (NTOK_PAD, 3*INNER)
        # stack heads along the sublane (row) axis
        qkv_s = jnp.concatenate(
            [qkv[:, hh * 3 * DIM_HEAD:(hh + 1) * 3 * DIM_HEAD] for hh in range(HEADS)],
            axis=0)                                                   # (HN, 3*Dh)
        q_s = qkv_s[:, 0:DIM_HEAD]
        k_s = qkv_s[:, DIM_HEAD:2 * DIM_HEAD]
        v_s = qkv_s[:, 2 * DIM_HEAD:3 * DIM_HEAD]

        dots = jax.lax.dot_general(q_s, k_s, (((1,), (1,)), ((), ())),
                                   preferred_element_type=f32) * SCALE + attn_bias
        # LN-bounded inputs -> max-subtraction dropped; masked (-1e30) columns underflow to 0.
        e = jnp.exp(dots)
        attn = e * pl.reciprocal(jnp.sum(e, axis=-1, keepdims=True), approx=True)
        out_s = jnp.dot(attn, v_s, preferred_element_type=f32)        # (HN, Dh)

        # single out-projection matmul with per-head weights concatenated on lanes
        z = jnp.dot(out_s, wl_ref[wr + L_WO:wr + L_WO + DIM_HEAD, 0:HEADS * DIM],
                    preferred_element_type=f32)                       # (HN, HEADS*DIM)
        y = vec_ref[vr + 2:vr + 3, 0:DIM]                             # out-proj bias
        for hh in range(HEADS):
            y = y + z[hh * NTOK_PAD:(hh + 1) * NTOK_PAD, hh * DIM:(hh + 1) * DIM]
        x = x + y

        # FeedForward: LN -> Linear -> GELU -> Linear (+residual)
        xn = _layernorm(x, vec_ref[vr + 3:vr + 4, 0:DIM], vec_ref[vr + 4:vr + 5, 0:DIM])
        hm = jnp.dot(xn, wl_ref[wr + L_W1:wr + L_W1 + DIM, 0:MLP_DIM],
                     preferred_element_type=f32) + vec_ref[vr + 5:vr + 6, 0:MLP_DIM]
        hm = _gelu(hm)
        x = x + jnp.dot(hm, wl_ref[wr + L_W2:wr + L_W2 + MLP_DIM, 0:DIM],
                        preferred_element_type=f32) + vec_ref[vr + 6:vr + 7, 0:DIM]

    # ---- classifier head on the cls rows only (single lane-dense 128-wide store) ----
    x_cls = jnp.concatenate([x[b * SEQ_PAD:b * SEQ_PAD + 1, :] for b in range(BATCH)], axis=0)
    xh = _layernorm(x_cls, vec_ref[V_HEAD_LN_G:V_HEAD_LN_G + 1, 0:DIM],
                    vec_ref[V_HEAD_LN_B:V_HEAD_LN_B + 1, 0:DIM])
    logits = (jnp.dot(xh, wl_ref[L_HEADW:L_HEADW + DIM, :], preferred_element_type=f32)
              + vec_ref[V_HEAD_B:V_HEAD_B + 1, 0:NC_PAD])
    o_ref[...] = logits


# ------------------------------ parameter init --------------------------------
def init_params(key):
    def nrm(k, shape, scale=0.02):
        return scale * jax.random.normal(k, shape, dtype=jnp.float32)

    keys = iter(jax.random.split(key, 64))
    params = {}
    params["patch_embed"] = {
        "ln1_g": 1.0 + nrm(next(keys), (1, PATCH_DIM), 0.1),
        "ln1_b": nrm(next(keys), (1, PATCH_DIM), 0.1),
        "w": nrm(next(keys), (PATCH_DIM, DIM)),
        "b": nrm(next(keys), (1, DIM)),
        "ln2_g": 1.0 + nrm(next(keys), (1, DIM), 0.1),
        "ln2_b": nrm(next(keys), (1, DIM), 0.1),
    }
    params["cls_token"] = jax.random.normal(next(keys), (1, 1, DIM), dtype=jnp.float32)
    params["pos_emb"] = jax.random.normal(next(keys), (1, SEQ, DIM), dtype=jnp.float32)
    layers = []
    for _ in range(DEPTH):
        attn = {
            "ln_g": 1.0 + nrm(next(keys), (1, DIM), 0.1),
            "ln_b": nrm(next(keys), (1, DIM), 0.1),
            "wqkv": nrm(next(keys), (DIM, 3 * INNER)),
            "wo": nrm(next(keys), (INNER, DIM)),
            "bo": nrm(next(keys), (1, DIM)),
        }
        ff = {
            "ln_g": 1.0 + nrm(next(keys), (1, DIM), 0.1),
            "ln_b": nrm(next(keys), (1, DIM), 0.1),
            "w1": nrm(next(keys), (DIM, MLP_DIM)),
            "b1": nrm(next(keys), (1, MLP_DIM)),
            "w2": nrm(next(keys), (MLP_DIM, DIM)),
            "b2": nrm(next(keys), (1, DIM)),
        }
        layers.append({"attn": attn, "ff": ff})
    params["layers"] = layers
    params["head"] = {
        "ln_g": 1.0 + nrm(next(keys), (1, DIM), 0.1),
        "ln_b": nrm(next(keys), (1, DIM), 0.1),
        "w": nrm(next(keys), (DIM, NUM_CLASSES)),
        "b": nrm(next(keys), (1, NUM_CLASSES)),
    }
    return params


# --------------------------- weight packing (host-side) -----------------------
def pack_params(params):
    pe = params["patch_embed"]
    hd = params["head"]

    # ---- vector slab: all small per-row vectors + precomputed masks ----
    vec = jnp.zeros((V_ROWS, PATCH_DIM), jnp.float32)
    vec = vec.at[V_PE_LN1_G, :].set(pe["ln1_g"][0])
    vec = vec.at[V_PE_LN1_B, :].set(pe["ln1_b"][0])
    vec = vec.at[V_PE_B, :DIM].set(pe["b"][0])
    vec = vec.at[V_PE_LN2_G, :DIM].set(pe["ln2_g"][0])
    vec = vec.at[V_PE_LN2_B, :DIM].set(pe["ln2_b"][0])
    vec = vec.at[V_HEAD_LN_G, :DIM].set(hd["ln_g"][0])
    vec = vec.at[V_HEAD_LN_B, :DIM].set(hd["ln_b"][0])
    vec = vec.at[V_HEAD_B, :NUM_CLASSES].set(hd["b"][0])

    # token base: (cls + pos0) at cls rows, pos at patch rows, 0 at pad rows
    cls = params["cls_token"][0, 0]                 # (DIM,)
    pos = params["pos_emb"][0]                      # (SEQ, DIM)
    base = jnp.zeros((NTOK_PAD, DIM), jnp.float32)
    for b in range(BATCH):
        base = base.at[b * SEQ_PAD].set(cls + pos[0])
        base = base.at[b * SEQ_PAD + 1:b * SEQ_PAD + SEQ].set(pos[1:])
    vec = vec.at[V_TOKBASE:V_TOKBASE + NTOK_PAD, :DIM].set(base)

    # 0/1 mask selecting real patch rows (1 <= row%8 < SEQ)
    spos = jnp.arange(NTOK_PAD) % SEQ_PAD
    pmask = ((spos >= 1) & (spos < SEQ)).astype(jnp.float32)
    vec = vec.at[V_PATCHMASK:V_PATCHMASK + NTOK_PAD, :DIM].set(
        jnp.broadcast_to(pmask[:, None], (NTOK_PAD, DIM)))

    # additive attention bias: same head block, same batch block, real key columns
    r = jnp.arange(HN)
    head = r // NTOK_PAD
    tok = r % NTOK_PAD
    bat = tok // SEQ_PAD
    seq = tok % SEQ_PAD
    ok = ((head[:, None] == head[None, :]) & (bat[:, None] == bat[None, :])
          & (seq[None, :] < SEQ))
    vec = vec.at[V_ATTNBIAS:V_ATTNBIAS + HN, :HN].set(
        jnp.where(ok, 0.0, _NEG_INF).astype(jnp.float32))

    # per-layer small vectors
    for l, layer in enumerate(params["layers"]):
        at, ff = layer["attn"], layer["ff"]
        r0 = V_LAYER0 + l * V_PER_LAYER
        vec = vec.at[r0 + 0, :DIM].set(at["ln_g"][0])
        vec = vec.at[r0 + 1, :DIM].set(at["ln_b"][0])
        vec = vec.at[r0 + 2, :DIM].set(at["bo"][0])
        vec = vec.at[r0 + 3, :DIM].set(ff["ln_g"][0])
        vec = vec.at[r0 + 4, :DIM].set(ff["ln_b"][0])
        vec = vec.at[r0 + 5, :MLP_DIM].set(ff["b1"][0])
        vec = vec.at[r0 + 6, :DIM].set(ff["b2"][0])

    # ---- weight slab: all layer matrices + classifier weight, 128 lanes wide ----
    wl = jnp.zeros((WL_ROWS, 128), jnp.float32)
    for l, layer in enumerate(params["layers"]):
        at, ff = layer["attn"], layer["ff"]
        r0 = l * L_SIZE
        w = at["wqkv"]                              # (DIM, 3*INNER): [Q h0|h1, K h0|h1, V h0|h1]
        per_head = [jnp.concatenate(
            [w[:, 0 * INNER + h * DIM_HEAD:0 * INNER + (h + 1) * DIM_HEAD],
             w[:, 1 * INNER + h * DIM_HEAD:1 * INNER + (h + 1) * DIM_HEAD],
             w[:, 2 * INNER + h * DIM_HEAD:2 * INNER + (h + 1) * DIM_HEAD]], axis=1)
            for h in range(HEADS)]
        wl = wl.at[r0 + L_WQKV:r0 + L_WQKV + DIM, :3 * INNER].set(
            jnp.concatenate(per_head, axis=1))
        wo_cat = jnp.concatenate(
            [at["wo"][h * DIM_HEAD:(h + 1) * DIM_HEAD, :] for h in range(HEADS)], axis=1)
        wl = wl.at[r0 + L_WO:r0 + L_WO + DIM_HEAD, :HEADS * DIM].set(wo_cat)
        wl = wl.at[r0 + L_W1:r0 + L_W1 + DIM, :MLP_DIM].set(ff["w1"])
        wl = wl.at[r0 + L_W2:r0 + L_W2 + MLP_DIM, :DIM].set(ff["w2"])
    wl = wl.at[L_HEADW:L_HEADW + DIM, :NUM_CLASSES].set(hd["w"])

    return vec, pe["w"], wl


# ------------------------------ forward (Pallas) ------------------------------
def _patchify(img):
    # einops: 'b c (h p1) (w p2) -> b (h w) (p1 p2 c)'
    B = img.shape[0]
    hp = IMAGE_SIZE // PATCH_SIZE
    x = img.reshape(B, CHANNELS, hp, PATCH_SIZE, hp, PATCH_SIZE)
    x = jnp.transpose(x, (0, 2, 4, 3, 5, 1))       # b h w p1 p2 c
    return x.reshape(B, NUM_PATCHES, PATCH_DIM)


def _prep_input(img):
    # lay patches out in the final padded token-row layout (cls/pad rows zero)
    p = _patchify(img)
    xp = jnp.zeros((NTOK_PAD, PATCH_DIM), jnp.float32)
    for b in range(BATCH):
        xp = xp.at[b * SEQ_PAD + 1:b * SEQ_PAD + 1 + NUM_PATCHES].set(p[b])
    return xp


def _full_spec(arr):
    return pl.BlockSpec(arr.shape, lambda i, _nd=arr.ndim: (0,) * _nd)


def vit_forward(img, params):
    xp = _prep_input(img)
    vec, wpe, wl = pack_params(params)
    args = [xp, vec, wpe, wl]
    out = pl.pallas_call(
        vit_kernel,
        out_shape=jax.ShapeDtypeStruct((BATCH, NC_PAD), jnp.float32),
        grid=(1,),
        in_specs=[_full_spec(a) for a in args],
        out_specs=pl.BlockSpec((BATCH, NC_PAD), lambda i: (0, 0)),
        compiler_params=pltpu.CompilerParams(
            dimension_semantics=("arbitrary",)),   # single TC; nothing to shard
    )(*args)
    return out[:, :NUM_CLASSES]


# ------------------------------ pure-JAX reference ----------------------------
def vit_reference(img, params):
    x = _patchify(img)
    pe = params["patch_embed"]
    x = _layernorm_ref(x, pe["ln1_g"], pe["ln1_b"])
    x = x @ pe["w"] + pe["b"]
    x = _layernorm_ref(x, pe["ln2_g"], pe["ln2_b"])
    B = x.shape[0]
    cls = jnp.broadcast_to(params["cls_token"], (B, 1, DIM))
    x = jnp.concatenate([cls, x], axis=1) + params["pos_emb"][:, :SEQ]
    for layer in params["layers"]:
        at = layer["attn"]
        xn = _layernorm_ref(x, at["ln_g"], at["ln_b"])
        qkv = xn @ at["wqkv"]
        q, k, v = jnp.split(qkv, 3, axis=-1)
        q = q.reshape(B, SEQ, HEADS, DIM_HEAD).transpose(0, 2, 1, 3)
        k = k.reshape(B, SEQ, HEADS, DIM_HEAD).transpose(0, 2, 1, 3)
        v = v.reshape(B, SEQ, HEADS, DIM_HEAD).transpose(0, 2, 1, 3)
        dots = jnp.einsum("bhqd,bhkd->bhqk", q, k) * SCALE
        attn = jax.nn.softmax(dots, axis=-1)
        out = jnp.einsum("bhqk,bhkd->bhqd", attn, v)
        out = out.transpose(0, 2, 1, 3).reshape(B, SEQ, INNER)
        x = out @ at["wo"] + at["bo"] + x
        ff = layer["ff"]
        h = _layernorm_ref(x, ff["ln_g"], ff["ln_b"])
        h = _gelu(h @ ff["w1"] + ff["b1"])
        x = h @ ff["w2"] + ff["b2"] + x
    x = x[:, 0]
    hd = params["head"]
    return _layernorm_ref(x, hd["ln_g"], hd["ln_b"]) @ hd["w"] + hd["b"]


# ------------------------------------ main -------------------------------------
if __name__ == "__main__":
    key = jax.random.PRNGKey(0)
    k_img, k_par = jax.random.split(key)
    img = jax.random.normal(k_img, (BATCH, CHANNELS, IMAGE_SIZE, IMAGE_SIZE),
                            dtype=jnp.float32)
    params = init_params(k_par)

    fwd = jax.jit(vit_forward)
    out = jax.block_until_ready(fwd(img, params))
    ref = jax.block_until_ready(vit_reference(img, params))

    assert out.shape == (BATCH, NUM_CLASSES), out.shape
    max_err = float(jnp.max(jnp.abs(out - ref)))
    assert jnp.allclose(out, ref, rtol=1e-3, atol=1e-3), f"max abs err {max_err}"
    print("KERNEL_OK")
</pallas_src>

<mosaic_0001>
module attributes {stable_mosaic.version = 11 : i64} {
  func.func @vit_kernel(%arg0: i32, %arg1: memref<16x256xf32, #tpu.memory_space<vmem>>, %arg2: memref<88x256xf32, #tpu.memory_space<vmem>>, %arg3: memref<256x32xf32, #tpu.memory_space<vmem>>, %arg4: memref<320x128xf32, #tpu.memory_space<vmem>>, %arg5: memref<2x128xf32, #tpu.memory_space<vmem>>) attributes {dimension_semantics = [#tpu.dimension_semantics<arbitrary>], iteration_bounds = array<i64: 1>, scalar_prefetch = 0 : i64, scratch_operands = 0 : i64, tpu.core_type = #tpu.core_type<tc>, window_params = [{pipeline_mode = #tpu.pipeline_mode<synchronous>, transform_indices = @transform_0, window_bounds = array<i64: 16, 256>}, {pipeline_mode = #tpu.pipeline_mode<synchronous>, transform_indices = @transform_1, window_bounds = array<i64: 88, 256>}, {pipeline_mode = #tpu.pipeline_mode<synchronous>, transform_indices = @transform_2, window_bounds = array<i64: 256, 32>}, {pipeline_mode = #tpu.pipeline_mode<synchronous>, transform_indices = @transform_3, window_bounds = array<i64: 320, 128>}, {pipeline_mode = #tpu.pipeline_mode<synchronous>, transform_indices = @transform_4, window_bounds = array<i64: 2, 128>}]} {
    %c8 = arith.constant 8 : index
    %c0 = arith.constant 0 : index
    %0 = vector.load %arg2[%c8, %c0] : memref<88x256xf32, #tpu.memory_space<vmem>>, vector<16x32xf32>
    %c24 = arith.constant 24 : index
    %c0_0 = arith.constant 0 : index
    %1 = vector.load %arg2[%c24, %c0_0] : memref<88x256xf32, #tpu.memory_space<vmem>>, vector<16x32xf32>
    %c40 = arith.constant 40 : index
    %c0_1 = arith.constant 0 : index
    %2 = vector.load %arg2[%c40, %c0_1] : memref<88x256xf32, #tpu.memory_space<vmem>>, vector<32x32xf32>
    %c0_2 = arith.constant 0 : index
    %c0_3 = arith.constant 0 : index
    %3 = vector.load %arg1[%c0_2, %c0_3] : memref<16x256xf32, #tpu.memory_space<vmem>>, vector<16x256xf32>
    %c0_4 = arith.constant 0 : index
    %c0_5 = arith.constant 0 : index
    %4 = vector.load %arg2[%c0_4, %c0_5] : memref<88x256xf32, #tpu.memory_space<vmem>>, vector<1x256xf32>
    %c1 = arith.constant 1 : index
    %c0_6 = arith.constant 0 : index
    %5 = vector.load %arg2[%c1, %c0_6] : memref<88x256xf32, #tpu.memory_space<vmem>>, vector<1x256xf32>
    %cst = arith.constant dense<0.000000e+00> : vector<16xf32>
    %6 = vector.multi_reduction <add>, %3, %cst [1] : vector<16x256xf32> to vector<16xf32>
    %7 = vector.shape_cast %6 : vector<16xf32> to vector<16x1xf32>
    %cst_7 = arith.constant 2.560000e+02 : f32
    %8 = vector.broadcast %cst_7 : f32 to vector<16x1xf32>
    %9 = arith.divf %7, %8 : vector<16x1xf32>
    %10 = arith.mulf %3, %3 : vector<16x256xf32>
    %cst_8 = arith.constant dense<0.000000e+00> : vector<16xf32>
    %11 = vector.multi_reduction <add>, %10, %cst_8 [1] : vector<16x256xf32> to vector<16xf32>
    %12 = vector.shape_cast %11 : vector<16xf32> to vector<16x1xf32>
    %cst_9 = arith.constant 2.560000e+02 : f32
    %13 = vector.broadcast %cst_9 : f32 to vector<16x1xf32>
    %14 = arith.divf %12, %13 : vector<16x1xf32>
    %15 = arith.mulf %9, %9 : vector<16x1xf32>
    %16 = arith.subf %14, %15 : vector<16x1xf32>
    %cst_10 = arith.constant 0.000000e+00 : f32
    %17 = vector.broadcast %cst_10 : f32 to vector<16x1xf32>
    %18 = arith.maximumf %16, %17 : vector<16x1xf32>
    %cst_11 = arith.constant 9.99999974E-6 : f32
    %19 = vector.broadcast %cst_11 : f32 to vector<16x1xf32>
    %20 = arith.addf %18, %19 : vector<16x1xf32>
    %21 = math.rsqrt %20 : vector<16x1xf32>
    %22 = vector.broadcast %9 : vector<16x1xf32> to vector<16x256xf32>
    %23 = arith.subf %3, %22 : vector<16x256xf32>
    %24 = vector.broadcast %21 : vector<16x1xf32> to vector<16x256xf32>
    %25 = vector.broadcast %4 : vector<1x256xf32> to vector<16x256xf32>
    %26 = arith.mulf %24, %25 : vector<16x256xf32>
    %27 = arith.mulf %23, %26 : vector<16x256xf32>
    %28 = vector.broadcast %5 : vector<1x256xf32> to vector<16x256xf32>
    %29 = arith.addf %27, %28 : vector<16x256xf32>
    %c0_12 = arith.constant 0 : index
    %c0_13 = arith.constant 0 : index
    %30 = vector.load %arg3[%c0_12, %c0_13] : memref<256x32xf32, #tpu.memory_space<vmem>>, vector<256x32xf32>
    %cst_14 = arith.constant dense<0.000000e+00> : vector<16x32xf32>
    %31 = tpu.matmul %29, %30, %cst_14 {dimension_numbers = #tpu.dot_dimension_numbers<[1], [0], [0], [1], [0, 0, 1, 1], [], []>} : vector<16x256xf32>, vector<256x32xf32>, vector<16x32xf32> -> vector<16x32xf32>
    %c2 = arith.constant 2 : index
    %c0_15 = arith.constant 0 : index
    %32 = vector.load %arg2[%c2, %c0_15] : memref<88x256xf32, #tpu.memory_space<vmem>>, vector<1x32xf32>
    %33 = vector.broadcast %32 : vector<1x32xf32> to vector<16x32xf32>
    %34 = arith.addf %31, %33 : vector<16x32xf32>
    %c3 = arith.constant 3 : index
    %c0_16 = arith.constant 0 : index
    %35 = vector.load %arg2[%c3, %c0_16] : memref<88x256xf32, #tpu.memory_space<vmem>>, vector<1x32xf32>
    %c4 = arith.constant 4 : index
    %c0_17 = arith.constant 0 : index
    %36 = vector.load %arg2[%c4, %c0_17] : memref<88x256xf32, #tpu.memory_space<vmem>>, vector<1x32xf32>
    %cst_18 = arith.constant dense<0.000000e+00> : vector<16xf32>
    %37 = vector.multi_reduction <add>, %34, %cst_18 [1] : vector<16x32xf32> to vector<16xf32>
    %38 = vector.shape_cast %37 : vector<16xf32> to vector<16x1xf32>
    %cst_19 = arith.constant 3.200000e+01 : f32
    %39 = vector.broadcast %cst_19 : f32 to vector<16x1xf32>
    %40 = arith.divf %38, %39 : vector<16x1xf32>
    %41 = arith.mulf %34, %34 : vector<16x32xf32>
    %cst_20 = arith.constant dense<0.000000e+00> : vector<16xf32>
    %42 = vector.multi_reduction <add>, %41, %cst_20 [1] : vector<16x32xf32> to vector<16xf32>
    %43 = vector.shape_cast %42 : vector<16xf32> to vector<16x1xf32>
    %cst_21 = arith.constant 3.200000e+01 : f32
    %44 = vector.broadcast %cst_21 : f32 to vector<16x1xf32>
    %45 = arith.divf %43, %44 : vector<16x1xf32>
    %46 = arith.mulf %40, %40 : vector<16x1xf32>
    %47 = arith.subf %45, %46 : vector<16x1xf32>
    %cst_22 = arith.constant 0.000000e+00 : f32
    %48 = vector.broadcast %cst_22 : f32 to vector<16x1xf32>
    %49 = arith.maximumf %47, %48 : vector<16x1xf32>
    %cst_23 = arith.constant 9.99999974E-6 : f32
    %50 = vector.broadcast %cst_23 : f32 to vector<16x1xf32>
    %51 = arith.addf %49, %50 : vector<16x1xf32>
    %52 = math.rsqrt %51 : vector<16x1xf32>
    %53 = vector.broadcast %40 : vector<16x1xf32> to vector<16x32xf32>
    %54 = arith.subf %34, %53 : vector<16x32xf32>
    %55 = vector.broadcast %52 : vector<16x1xf32> to vector<16x32xf32>
    %56 = vector.broadcast %35 : vector<1x32xf32> to vector<16x32xf32>
    %57 = arith.mulf %55, %56 : vector<16x32xf32>
    %58 = arith.mulf %54, %57 : vector<16x32xf32>
    %59 = vector.broadcast %36 : vector<1x32xf32> to vector<16x32xf32>
    %60 = arith.addf %58, %59 : vector<16x32xf32>
    %61 = arith.mulf %60, %1 : vector<16x32xf32>
    %62 = arith.addf %61, %0 : vector<16x32xf32>
    %c72 = arith.constant 72 : index
    %c0_24 = arith.constant 0 : index
    %63 = vector.load %arg2[%c72, %c0_24] : memref<88x256xf32, #tpu.memory_space<vmem>>, vector<1x32xf32>
    %c73 = arith.constant 73 : index
    %c0_25 = arith.constant 0 : index
    %64 = vector.load %arg2[%c73, %c0_25] : memref<88x256xf32, #tpu.memory_space<vmem>>, vector<1x32xf32>
    %cst_26 = arith.constant dense<0.000000e+00> : vector<16xf32>
    %65 = vector.multi_reduction <add>, %62, %cst_26 [1] : vector<16x32xf32> to vector<16xf32>
    %66 = vector.shape_cast %65 : vector<16xf32> to vector<16x1xf32>
    %cst_27 = arith.constant 3.200000e+01 : f32
    %67 = vector.broadcast %cst_27 : f32 to vector<16x1xf32>
    %68 = arith.divf %66, %67 : vector<16x1xf32>
    %69 = arith.mulf %62, %62 : vector<16x32xf32>
    %cst_28 = arith.constant dense<0.000000e+00> : vector<16xf32>
    %70 = vector.multi_reduction <add>, %69, %cst_28 [1] : vector<16x32xf32> to vector<16xf32>
    %71 = vector.shape_cast %70 : vector<16xf32> to vector<16x1xf32>
    %cst_29 = arith.constant 3.200000e+01 : f32
    %72 = vector.broadcast %cst_29 : f32 to vector<16x1xf32>
    %73 = arith.divf %71, %72 : vector<16x1xf32>
    %74 = arith.mulf %68, %68 : vector<16x1xf32>
    %75 = arith.subf %73, %74 : vector<16x1xf32>
    %cst_30 = arith.constant 0.000000e+00 : f32
    %76 = vector.broadcast %cst_30 : f32 to vector<16x1xf32>
    %77 = arith.maximumf %75, %76 : vector<16x1xf32>
    %cst_31 = arith.constant 9.99999974E-6 : f32
    %78 = vector.broadcast %cst_31 : f32 to vector<16x1xf32>
    %79 = arith.addf %77, %78 : vector<16x1xf32>
    %80 = math.rsqrt %79 : vector<16x1xf32>
    %81 = vector.broadcast %68 : vector<16x1xf32> to vector<16x32xf32>
    %82 = arith.subf %62, %81 : vector<16x32xf32>
    %83 = vector.broadcast %80 : vector<16x1xf32> to vector<16x32xf32>
    %84 = vector.broadcast %63 : vector<1x32xf32> to vector<16x32xf32>
    %85 = arith.mulf %83, %84 : vector<16x32xf32>
    %86 = arith.mulf %82, %85 : vector<16x32xf32>
    %87 = vector.broadcast %64 : vector<1x32xf32> to vector<16x32xf32>
    %88 = arith.addf %86, %87 : vector<16x32xf32>
    %c0_32 = arith.constant 0 : index
    %c0_33 = arith.constant 0 : index
    %89 = vector.load %arg4[%c0_32, %c0_33] : memref<320x128xf32, #tpu.memory_space<vmem>>, vector<32x96xf32>
    %cst_34 = arith.constant dense<0.000000e+00> : vector<16x96xf32>
    %90 = tpu.matmul %88, %89, %cst_34 {dimension_numbers = #tpu.dot_dimension_numbers<[1], [0], [0], [1], [0, 0, 1, 1], [], []>} : vector<16x32xf32>, vector<32x96xf32>, vector<16x96xf32> -> vector<16x96xf32>
    %91 = vector.extract_strided_slice %90 {offsets = [0, 0], sizes = [16, 48], strides = [1, 1]} : vector<16x96xf32> to vector<16x48xf32>
    %92 = vector.extract_strided_slice %90 {offsets = [0, 48], sizes = [16, 48], strides = [1, 1]} : vector<16x96xf32> to vector<16x48xf32>
    %93 = tpu.concatenate %91, %92 in 0 : vector<16x48xf32>, vector<16x48xf32> -> vector<32x48xf32>
    %94 = vector.extract_strided_slice %93 {offsets = [0, 0], sizes = [32, 16], strides = [1, 1]} : vector<32x48xf32> to vector<32x16xf32>
    %95 = vector.extract_strided_slice %93 {offsets = [0, 16], sizes = [32, 16], strides = [1, 1]} : vector<32x48xf32> to vector<32x16xf32>
    %96 = vector.extract_strided_slice %93 {offsets = [0, 32], sizes = [32, 16], strides = [1, 1]} : vector<32x48xf32> to vector<32x16xf32>
    %cst_35 = arith.constant dense<0.000000e+00> : vector<32x32xf32>
    %97 = tpu.matmul %94, %95, %cst_35 {dimension_numbers = #tpu.dot_dimension_numbers<[1], [1], [0], [0], [0, 0, 1, 0], [], []>} : vector<32x16xf32>, vector<32x16xf32>, vector<32x32xf32> -> vector<32x32xf32>
    %cst_36 = arith.constant 2.500000e-01 : f32
    %98 = vector.broadcast %cst_36 : f32 to vector<32x32xf32>
    %99 = arith.mulf %97, %98 : vector<32x32xf32>
    %100 = arith.addf %99, %2 : vector<32x32xf32>
    %101 = math.exp %100 : vector<32x32xf32>
    %cst_37 = arith.constant dense<0.000000e+00> : vector<32xf32>
    %102 = vector.multi_reduction <add>, %101, %cst_37 [1] : vector<32x32xf32> to vector<32xf32>
    %103 = vector.shape_cast %102 : vector<32xf32> to vector<32x1xf32>
    %104 = tpu.reciprocal %103 {approx = true} : vector<32x1xf32> -> vector<32x1xf32>
    %105 = vector.broadcast %104 : vector<32x1xf32> to vector<32x32xf32>
    %106 = arith.mulf %101, %105 : vector<32x32xf32>
    %cst_38 = arith.constant dense<0.000000e+00> : vector<32x16xf32>
    %107 = tpu.matmul %106, %96, %cst_38 {dimension_numbers = #tpu.dot_dimension_numbers<[1], [0], [0], [1], [0, 0, 1, 1], [], []>} : vector<32x32xf32>, vector<32x16xf32>, vector<32x16xf32> -> vector<32x16xf32>
    %c32 = arith.constant 32 : index
    %c0_39 = arith.constant 0 : index
    %108 = vector.load %arg4[%c32, %c0_39] : memref<320x128xf32, #tpu.memory_space<vmem>>, vector<16x64xf32>
    %cst_40 = arith.constant dense<0.000000e+00> : vector<32x64xf32>
    %109 = tpu.matmul %107, %108, %cst_40 {dimension_numbers = #tpu.dot_dimension_numbers<[1], [0], [0], [1], [0, 0, 1, 1], [], []>} : vector<32x16xf32>, vector<16x64xf32>, vector<32x64xf32> -> vector<32x64xf32>
    %c74 = arith.constant 74 : index
    %c0_41 = arith.constant 0 : index
    %110 = vector.load %arg2[%c74, %c0_41] : memref<88x256xf32, #tpu.memory_space<vmem>>, vector<1x32xf32>
    %111 = vector.extract_strided_slice %109 {offsets = [0, 0], sizes = [16, 32], strides = [1, 1]} : vector<32x64xf32> to vector<16x32xf32>
    %112 = vector.broadcast %110 : vector<1x32xf32> to vector<16x32xf32>
    %113 = arith.addf %112, %111 : vector<16x32xf32>
    %114 = vector.extract_strided_slice %109 {offsets = [16, 32], sizes = [16, 32], strides = [1, 1]} : vector<32x64xf32> to vector<16x32xf32>
    %115 = arith.addf %113, %114 : vector<16x32xf32>
    %116 = arith.addf %62, %115 : vector<16x32xf32>
    %c75 = arith.constant 75 : index
    %c0_42 = arith.constant 0 : index
    %117 = vector.load %arg2[%c75, %c0_42] : memref<88x256xf32, #tpu.memory_space<vmem>>, vector<1x32xf32>
    %c76 = arith.constant 76 : index
    %c0_43 = arith.constant 0 : index
    %118 = vector.load %arg2[%c76, %c0_43] : memref<88x256xf32, #tpu.memory_space<vmem>>, vector<1x32xf32>
    %cst_44 = arith.constant dense<0.000000e+00> : vector<16xf32>
    %119 = vector.multi_reduction <add>, %116, %cst_44 [1] : vector<16x32xf32> to vector<16xf32>
    %120 = vector.shape_cast %119 : vector<16xf32> to vector<16x1xf32>
    %cst_45 = arith.constant 3.200000e+01 : f32
    %121 = vector.broadcast %cst_45 : f32 to vector<16x1xf32>
    %122 = arith.divf %120, %121 : vector<16x1xf32>
    %123 = arith.mulf %116, %116 : vector<16x32xf32>
    %cst_46 = arith.constant dense<0.000000e+00> : vector<16xf32>
    %124 = vector.multi_reduction <add>, %123, %cst_46 [1] : vector<16x32xf32> to vector<16xf32>
    %125 = vector.shape_cast %124 : vector<16xf32> to vector<16x1xf32>
    %cst_47 = arith.constant 3.200000e+01 : f32
    %126 = vector.broadcast %cst_47 : f32 to vector<16x1xf32>
    %127 = arith.divf %125, %126 : vector<16x1xf32>
    %128 = arith.mulf %122, %122 : vector<16x1xf32>
    %129 = arith.subf %127, %128 : vector<16x1xf32>
    %cst_48 = arith.constant 0.000000e+00 : f32
    %130 = vector.broadcast %cst_48 : f32 to vector<16x1xf32>
    %131 = arith.maximumf %129, %130 : vector<16x1xf32>
    %cst_49 = arith.constant 9.99999974E-6 : f32
    %132 = vector.broadcast %cst_49 : f32 to vector<16x1xf32>
    %133 = arith.addf %131, %132 : vector<16x1xf32>
    %134 = math.rsqrt %133 : vector<16x1xf32>
    %135 = vector.broadcast %122 : vector<16x1xf32> to vector<16x32xf32>
    %136 = arith.subf %116, %135 : vector<16x32xf32>
    %137 = vector.broadcast %134 : vector<16x1xf32> to vector<16x32xf32>
    %138 = vector.broadcast %117 : vector<1x32xf32> to vector<16x32xf32>
    %139 = arith.mulf %137, %138 : vector<16x32xf32>
    %140 = arith.mulf %136, %139 : vector<16x32xf32>
    %141 = vector.broadcast %118 : vector<1x32xf32> to vector<16x32xf32>
    %142 = arith.addf %140, %141 : vector<16x32xf32>
    %c48 = arith.constant 48 : index
    %c0_50 = arith.constant 0 : index
    %143 = vector.load %arg4[%c48, %c0_50] : memref<320x128xf32, #tpu.memory_space<vmem>>, vector<32x64xf32>
    %cst_51 = arith.constant dense<0.000000e+00> : vector<16x64xf32>
    %144 = tpu.matmul %142, %143, %cst_51 {dimension_numbers = #tpu.dot_dimension_numbers<[1], [0], [0], [1], [0, 0, 1, 1], [], []>} : vector<16x32xf32>, vector<32x64xf32>, vector<16x64xf32> -> vector<16x64xf32>
    %c77 = arith.constant 77 : index
    %c0_52 = arith.constant 0 : index
    %145 = vector.load %arg2[%c77, %c0_52] : memref<88x256xf32, #tpu.memory_space<vmem>>, vector<1x64xf32>
    %146 = vector.broadcast %145 : vector<1x64xf32> to vector<16x64xf32>
    %147 = arith.addf %144, %146 : vector<16x64xf32>
    %cst_53 = arith.constant 5.000000e-01 : f32
    %148 = vector.broadcast %cst_53 : f32 to vector<16x64xf32>
    %149 = arith.mulf %148, %147 : vector<16x64xf32>
    %cst_54 = arith.constant 4.471500e-02 : f32
    %150 = vector.broadcast %cst_54 : f32 to vector<16x64xf32>
    %151 = arith.mulf %150, %147 : vector<16x64xf32>
    %152 = arith.mulf %151, %147 : vector<16x64xf32>
    %153 = arith.mulf %152, %147 : vector<16x64xf32>
    %154 = arith.addf %147, %153 : vector<16x64xf32>
    %cst_55 = arith.constant 0.797884583 : f32
    %155 = vector.broadcast %cst_55 : f32 to vector<16x64xf32>
    %156 = arith.mulf %155, %154 : vector<16x64xf32>
    %157 = math.tanh %156 : vector<16x64xf32>
    %cst_56 = arith.constant 1.000000e+00 : f32
    %158 = vector.broadcast %cst_56 : f32 to vector<16x64xf32>
    %159 = arith.addf %158, %157 : vector<16x64xf32>
    %160 = arith.mulf %149, %159 : vector<16x64xf32>
    %c80 = arith.constant 80 : index
    %c0_57 = arith.constant 0 : index
    %161 = vector.load %arg4[%c80, %c0_57] : memref<320x128xf32, #tpu.memory_space<vmem>>, vector<64x32xf32>
    %cst_58 = arith.constant dense<0.000000e+00> : vector<16x32xf32>
    %162 = tpu.matmul %160, %161, %cst_58 {dimension_numbers = #tpu.dot_dimension_numbers<[1], [0], [0], [1], [0, 0, 1, 1], [], []>} : vector<16x64xf32>, vector<64x32xf32>, vector<16x32xf32> -> vector<16x32xf32>
    %163 = arith.addf %116, %162 : vector<16x32xf32>
    %c78 = arith.constant 78 : index
    %c0_59 = arith.constant 0 : index
    %164 = vector.load %arg2[%c78, %c0_59] : memref<88x256xf32, #tpu.memory_space<vmem>>, vector<1x32xf32>
    %165 = vector.broadcast %164 : vector<1x32xf32> to vector<16x32xf32>
    %166 = arith.addf %163, %165 : vector<16x32xf32>
    %c80_60 = arith.constant 80 : index
    %c0_61 = arith.constant 0 : index
    %167 = vector.load %arg2[%c80_60, %c0_61] : memref<88x256xf32, #tpu.memory_space<vmem>>, vector<1x32xf32>
    %c81 = arith.constant 81 : index
    %c0_62 = arith.constant 0 : index
    %168 = vector.load %arg2[%c81, %c0_62] : memref<88x256xf32, #tpu.memory_space<vmem>>, vector<1x32xf32>
    %cst_63 = arith.constant dense<0.000000e+00> : vector<16xf32>
    %169 = vector.multi_reduction <add>, %166, %cst_63 [1] : vector<16x32xf32> to vector<16xf32>
    %170 = vector.shape_cast %169 : vector<16xf32> to vector<16x1xf32>
    %cst_64 = arith.constant 3.200000e+01 : f32
    %171 = vector.broadcast %cst_64 : f32 to vector<16x1xf32>
    %172 = arith.divf %170, %171 : vector<16x1xf32>
    %173 = arith.mulf %166, %166 : vector<16x32xf32>
    %cst_65 = arith.constant dense<0.000000e+00> : vector<16xf32>
    %174 = vector.multi_reduction <add>, %173, %cst_65 [1] : vector<16x32xf32> to vector<16xf32>
    %175 = vector.shape_cast %174 : vector<16xf32> to vector<16x1xf32>
    %cst_66 = arith.constant 3.200000e+01 : f32
    %176 = vector.broadcast %cst_66 : f32 to vector<16x1xf32>
    %177 = arith.divf %175, %176 : vector<16x1xf32>
    %178 = arith.mulf %172, %172 : vector<16x1xf32>
    %179 = arith.subf %177, %178 : vector<16x1xf32>
    %cst_67 = arith.constant 0.000000e+00 : f32
    %180 = vector.broadcast %cst_67 : f32 to vector<16x1xf32>
    %181 = arith.maximumf %179, %180 : vector<16x1xf32>
    %cst_68 = arith.constant 9.99999974E-6 : f32
    %182 = vector.broadcast %cst_68 : f32 to vector<16x1xf32>
    %183 = arith.addf %181, %182 : vector<16x1xf32>
    %184 = math.rsqrt %183 : vector<16x1xf32>
    %185 = vector.broadcast %172 : vector<16x1xf32> to vector<16x32xf32>
    %186 = arith.subf %166, %185 : vector<16x32xf32>
    %187 = vector.broadcast %184 : vector<16x1xf32> to vector<16x32xf32>
    %188 = vector.broadcast %167 : vector<1x32xf32> to vector<16x32xf32>
    %189 = arith.mulf %187, %188 : vector<16x32xf32>
    %190 = arith.mulf %186, %189 : vector<16x32xf32>
    %191 = vector.broadcast %168 : vector<1x32xf32> to vector<16x32xf32>
    %192 = arith.addf %190, %191 : vector<16x32xf32>
    %c144 = arith.constant 144 : index
    %c0_69 = arith.constant 0 : index
    %193 = vector.load %arg4[%c144, %c0_69] : memref<320x128xf32, #tpu.memory_space<vmem>>, vector<32x96xf32>
    %cst_70 = arith.constant dense<0.000000e+00> : vector<16x96xf32>
    %194 = tpu.matmul %192, %193, %cst_70 {dimension_numbers = #tpu.dot_dimension_numbers<[1], [0], [0], [1], [0, 0, 1, 1], [], []>} : vector<16x32xf32>, vector<32x96xf32>, vector<16x96xf32> -> vector<16x96xf32>
    %195 = vector.extract_strided_slice %194 {offsets = [0, 0], sizes = [16, 48], strides = [1, 1]} : vector<16x96xf32> to vector<16x48xf32>
    %196 = vector.extract_strided_slice %194 {offsets = [0, 48], sizes = [16, 48], strides = [1, 1]} : vector<16x96xf32> to vector<16x48xf32>
    %197 = tpu.concatenate %195, %196 in 0 : vector<16x48xf32>, vector<16x48xf32> -> vector<32x48xf32>
    %198 = vector.extract_strided_slice %197 {offsets = [0, 0], sizes = [32, 16], strides = [1, 1]} : vector<32x48xf32> to vector<32x16xf32>
    %199 = vector.extract_strided_slice %197 {offsets = [0, 16], sizes = [32, 16], strides = [1, 1]} : vector<32x48xf32> to vector<32x16xf32>
    %200 = vector.extract_strided_slice %197 {offsets = [0, 32], sizes = [32, 16], strides = [1, 1]} : vector<32x48xf32> to vector<32x16xf32>
    %cst_71 = arith.constant dense<0.000000e+00> : vector<32x32xf32>
    %201 = tpu.matmul %198, %199, %cst_71 {dimension_numbers = #tpu.dot_dimension_numbers<[1], [1], [0], [0], [0, 0, 1, 0], [], []>} : vector<32x16xf32>, vector<32x16xf32>, vector<32x32xf32> -> vector<32x32xf32>
    %cst_72 = arith.constant 2.500000e-01 : f32
    %202 = vector.broadcast %cst_72 : f32 to vector<32x32xf32>
    %203 = arith.mulf %201, %202 : vector<32x32xf32>
    %204 = arith.addf %203, %2 : vector<32x32xf32>
    %205 = math.exp %204 : vector<32x32xf32>
    %cst_73 = arith.constant dense<0.000000e+00> : vector<32xf32>
    %206 = vector.multi_reduction <add>, %205, %cst_73 [1] : vector<32x32xf32> to vector<32xf32>
    %207 = vector.shape_cast %206 : vector<32xf32> to vector<32x1xf32>
    %208 = tpu.reciprocal %207 {approx = true} : vector<32x1xf32> -> vector<32x1xf32>
    %209 = vector.broadcast %208 : vector<32x1xf32> to vector<32x32xf32>
    %210 = arith.mulf %205, %209 : vector<32x32xf32>
    %cst_74 = arith.constant dense<0.000000e+00> : vector<32x16xf32>
    %211 = tpu.matmul %210, %200, %cst_74 {dimension_numbers = #tpu.dot_dimension_numbers<[1], [0], [0], [1], [0, 0, 1, 1], [], []>} : vector<32x32xf32>, vector<32x16xf32>, vector<32x16xf32> -> vector<32x16xf32>
    %c176 = arith.constant 176 : index
    %c0_75 = arith.constant 0 : index
    %212 = vector.load %arg4[%c176, %c0_75] : memref<320x128xf32, #tpu.memory_space<vmem>>, vector<16x64xf32>
    %cst_76 = arith.constant dense<0.000000e+00> : vector<32x64xf32>
    %213 = tpu.matmul %211, %212, %cst_76 {dimension_numbers = #tpu.dot_dimension_numbers<[1], [0], [0], [1], [0, 0, 1, 1], [], []>} : vector<32x16xf32>, vector<16x64xf32>, vector<32x64xf32> -> vector<32x64xf32>
    %c82 = arith.constant 82 : index
    %c0_77 = arith.constant 0 : index
    %214 = vector.load %arg2[%c82, %c0_77] : memref<88x256xf32, #tpu.memory_space<vmem>>, vector<1x32xf32>
    %215 = vector.extract_strided_slice %213 {offsets = [0, 0], sizes = [16, 32], strides = [1, 1]} : vector<32x64xf32> to vector<16x32xf32>
    %216 = vector.broadcast %214 : vector<1x32xf32> to vector<16x32xf32>
    %217 = arith.addf %216, %215 : vector<16x32xf32>
    %218 = vector.extract_strided_slice %213 {offsets = [16, 32], sizes = [16, 32], strides = [1, 1]} : vector<32x64xf32> to vector<16x32xf32>
    %219 = arith.addf %217, %218 : vector<16x32xf32>
    %220 = arith.addf %166, %219 : vector<16x32xf32>
    %c83 = arith.constant 83 : index
    %c0_78 = arith.constant 0 : index
    %221 = vector.load %arg2[%c83, %c0_78] : memref<88x256xf32, #tpu.memory_space<vmem>>, vector<1x32xf32>
    %c84 = arith.constant 84 : index
    %c0_79 = arith.constant 0 : index
    %222 = vector.load %arg2[%c84, %c0_79] : memref<88x256xf32, #tpu.memory_space<vmem>>, vector<1x32xf32>
    %cst_80 = arith.constant dense<0.000000e+00> : vector<16xf32>
    %223 = vector.multi_reduction <add>, %220, %cst_80 [1] : vector<16x32xf32> to vector<16xf32>
    %224 = vector.shape_cast %223 : vector<16xf32> to vector<16x1xf32>
    %cst_81 = arith.constant 3.200000e+01 : f32
    %225 = vector.broadcast %cst_81 : f32 to vector<16x1xf32>
    %226 = arith.divf %224, %225 : vector<16x1xf32>
    %227 = arith.mulf %220, %220 : vector<16x32xf32>
    %cst_82 = arith.constant dense<0.000000e+00> : vector<16xf32>
    %228 = vector.multi_reduction <add>, %227, %cst_82 [1] : vector<16x32xf32> to vector<16xf32>
    %229 = vector.shape_cast %228 : vector<16xf32> to vector<16x1xf32>
    %cst_83 = arith.constant 3.200000e+01 : f32
    %230 = vector.broadcast %cst_83 : f32 to vector<16x1xf32>
    %231 = arith.divf %229, %230 : vector<16x1xf32>
    %232 = arith.mulf %226, %226 : vector<16x1xf32>
    %233 = arith.subf %231, %232 : vector<16x1xf32>
    %cst_84 = arith.constant 0.000000e+00 : f32
    %234 = vector.broadcast %cst_84 : f32 to vector<16x1xf32>
    %235 = arith.maximumf %233, %234 : vector<16x1xf32>
    %cst_85 = arith.constant 9.99999974E-6 : f32
    %236 = vector.broadcast %cst_85 : f32 to vector<16x1xf32>
    %237 = arith.addf %235, %236 : vector<16x1xf32>
    %238 = math.rsqrt %237 : vector<16x1xf32>
    %239 = vector.broadcast %226 : vector<16x1xf32> to vector<16x32xf32>
    %240 = arith.subf %220, %239 : vector<16x32xf32>
    %241 = vector.broadcast %238 : vector<16x1xf32> to vector<16x32xf32>
    %242 = vector.broadcast %221 : vector<1x32xf32> to vector<16x32xf32>
    %243 = arith.mulf %241, %242 : vector<16x32xf32>
    %244 = arith.mulf %240, %243 : vector<16x32xf32>
    %245 = vector.broadcast %222 : vector<1x32xf32> to vector<16x32xf32>
    %246 = arith.addf %244, %245 : vector<16x32xf32>
    %c192 = arith.constant 192 : index
    %c0_86 = arith.constant 0 : index
    %247 = vector.load %arg4[%c192, %c0_86] : memref<320x128xf32, #tpu.memory_space<vmem>>, vector<32x64xf32>
    %cst_87 = arith.constant dense<0.000000e+00> : vector<16x64xf32>
    %248 = tpu.matmul %246, %247, %cst_87 {dimension_numbers = #tpu.dot_dimension_numbers<[1], [0], [0], [1], [0, 0, 1, 1], [], []>} : vector<16x32xf32>, vector<32x64xf32>, vector<16x64xf32> -> vector<16x64xf32>
    %c85 = arith.constant 85 : index
    %c0_88 = arith.constant 0 : index
    %249 = vector.load %arg2[%c85, %c0_88] : memref<88x256xf32, #tpu.memory_space<vmem>>, vector<1x64xf32>
    %250 = vector.broadcast %249 : vector<1x64xf32> to vector<16x64xf32>
    %251 = arith.addf %248, %250 : vector<16x64xf32>
    %cst_89 = arith.constant 5.000000e-01 : f32
    %252 = vector.broadcast %cst_89 : f32 to vector<16x64xf32>
    %253 = arith.mulf %252, %251 : vector<16x64xf32>
    %cst_90 = arith.constant 4.471500e-02 : f32
    %254 = vector.broadcast %cst_90 : f32 to vector<16x64xf32>
    %255 = arith.mulf %254, %251 : vector<16x64xf32>
    %256 = arith.mulf %255, %251 : vector<16x64xf32>
    %257 = arith.mulf %256, %251 : vector<16x64xf32>
    %258 = arith.addf %251, %257 : vector<16x64xf32>
    %cst_91 = arith.constant 0.797884583 : f32
    %259 = vector.broadcast %cst_91 : f32 to vector<16x64xf32>
    %260 = arith.mulf %259, %258 : vector<16x64xf32>
    %261 = math.tanh %260 : vector<16x64xf32>
    %cst_92 = arith.constant 1.000000e+00 : f32
    %262 = vector.broadcast %cst_92 : f32 to vector<16x64xf32>
    %263 = arith.addf %262, %261 : vector<16x64xf32>
    %264 = arith.mulf %253, %263 : vector<16x64xf32>
    %c224 = arith.constant 224 : index
    %c0_93 = arith.constant 0 : index
    %265 = vector.load %arg4[%c224, %c0_93] : memref<320x128xf32, #tpu.memory_space<vmem>>, vector<64x32xf32>
    %cst_94 = arith.constant dense<0.000000e+00> : vector<16x32xf32>
    %266 = tpu.matmul %264, %265, %cst_94 {dimension_numbers = #tpu.dot_dimension_numbers<[1], [0], [0], [1], [0, 0, 1, 1], [], []>} : vector<16x64xf32>, vector<64x32xf32>, vector<16x32xf32> -> vector<16x32xf32>
    %267 = arith.addf %220, %266 : vector<16x32xf32>
    %c86 = arith.constant 86 : index
    %c0_95 = arith.constant 0 : index
    %268 = vector.load %arg2[%c86, %c0_95] : memref<88x256xf32, #tpu.memory_space<vmem>>, vector<1x32xf32>
    %269 = vector.broadcast %268 : vector<1x32xf32> to vector<16x32xf32>
    %270 = arith.addf %267, %269 : vector<16x32xf32>
    %271 = vector.extract_strided_slice %270 {offsets = [0, 0], sizes = [1, 32], strides = [1, 1]} : vector<16x32xf32> to vector<1x32xf32>
    %272 = vector.extract_strided_slice %270 {offsets = [8, 0], sizes = [1, 32], strides = [1, 1]} : vector<16x32xf32> to vector<1x32xf32>
    %273 = tpu.concatenate %271, %272 in 0 : vector<1x32xf32>, vector<1x32xf32> -> vector<2x32xf32>
    %c5 = arith.constant 5 : index
    %c0_96 = arith.constant 0 : index
    %274 = vector.load %arg2[%c5, %c0_96] : memref<88x256xf32, #tpu.memory_space<vmem>>, vector<1x32xf32>
    %c6 = arith.constant 6 : index
    %c0_97 = arith.constant 0 : index
    %275 = vector.load %arg2[%c6, %c0_97] : memref<88x256xf32, #tpu.memory_space<vmem>>, vector<1x32xf32>
    %cst_98 = arith.constant dense<0.000000e+00> : vector<2xf32>
    %276 = vector.multi_reduction <add>, %273, %cst_98 [1] : vector<2x32xf32> to vector<2xf32>
    %277 = vector.shape_cast %276 : vector<2xf32> to vector<2x1xf32>
    %cst_99 = arith.constant 3.200000e+01 : f32
    %278 = vector.broadcast %cst_99 : f32 to vector<2x1xf32>
    %279 = arith.divf %277, %278 : vector<2x1xf32>
    %280 = arith.mulf %273, %273 : vector<2x32xf32>
    %cst_100 = arith.constant dense<0.000000e+00> : vector<2xf32>
    %281 = vector.multi_reduction <add>, %280, %cst_100 [1] : vector<2x32xf32> to vector<2xf32>
    %282 = vector.shape_cast %281 : vector<2xf32> to vector<2x1xf32>
    %cst_101 = arith.constant 3.200000e+01 : f32
    %283 = vector.broadcast %cst_101 : f32 to vector<2x1xf32>
    %284 = arith.divf %282, %283 : vector<2x1xf32>
    %285 = arith.mulf %279, %279 : vector<2x1xf32>
    %286 = arith.subf %284, %285 : vector<2x1xf32>
    %cst_102 = arith.constant 0.000000e+00 : f32
    %287 = vector.broadcast %cst_102 : f32 to vector<2x1xf32>
    %288 = arith.maximumf %286, %287 : vector<2x1xf32>
    %cst_103 = arith.constant 9.99999974E-6 : f32
    %289 = vector.broadcast %cst_103 : f32 to vector<2x1xf32>
    %290 = arith.addf %288, %289 : vector<2x1xf32>
    %291 = math.rsqrt %290 : vector<2x1xf32>
    %292 = vector.broadcast %279 : vector<2x1xf32> to vector<2x32xf32>
    %293 = arith.subf %273, %292 : vector<2x32xf32>
    %294 = vector.broadcast %291 : vector<2x1xf32> to vector<2x32xf32>
    %295 = vector.broadcast %274 : vector<1x32xf32> to vector<2x32xf32>
    %296 = arith.mulf %294, %295 : vector<2x32xf32>
    %297 = arith.mulf %293, %296 : vector<2x32xf32>
    %298 = vector.broadcast %275 : vector<1x32xf32> to vector<2x32xf32>
    %299 = arith.addf %297, %298 : vector<2x32xf32>
    %c288 = arith.constant 288 : index
    %c0_104 = arith.constant 0 : index
    %300 = vector.load %arg4[%c288, %c0_104] : memref<320x128xf32, #tpu.memory_space<vmem>>, vector<32x128xf32>
    %cst_105 = arith.constant dense<0.000000e+00> : vector<2x128xf32>
    %301 = tpu.matmul %299, %300, %cst_105 {dimension_numbers = #tpu.dot_dimension_numbers<[1], [0], [0], [1], [0, 0, 1, 1], [], []>} : vector<2x32xf32>, vector<32x128xf32>, vector<2x128xf32> -> vector<2x128xf32>
    %c7 = arith.constant 7 : index
    %c0_106 = arith.constant 0 : index
    %302 = vector.load %arg2[%c7, %c0_106] : memref<88x256xf32, #tpu.memory_space<vmem>>, vector<1x128xf32>
    %303 = vector.broadcast %302 : vector<1x128xf32> to vector<2x128xf32>
    %304 = arith.addf %301, %303 : vector<2x128xf32>
    %c0_107 = arith.constant 0 : index
    %c0_108 = arith.constant 0 : index
    %305 = vector.load %arg5[%c0_107, %c0_108] : memref<2x128xf32, #tpu.memory_space<vmem>>, vector<2x128xf32>
    tpu.vector_store %arg5[%c0_107, %c0_108], %304 {strides = array<i32>} : memref<2x128xf32, #tpu.memory_space<vmem>>, vector<2x128xf32>,
    return
  }
  func.func @transform_0(%arg0: i32) -> (i32, i32) {
    %c0_i32 = arith.constant 0 : i32
    %c0_i32_0 = arith.constant 0 : i32
    %c0_i32_1 = arith.constant 0 : i32
    return %c0_i32, %c0_i32_0 : i32, i32
  }
  func.func @transform_1(%arg0: i32) -> (i32, i32) {
    %c0_i32 = arith.constant 0 : i32
    %c0_i32_0 = arith.constant 0 : i32
    %c0_i32_1 = arith.constant 0 : i32
    return %c0_i32, %c0_i32_0 : i32, i32
  }
  func.func @transform_2(%arg0: i32) -> (i32, i32) {
    %c0_i32 = arith.constant 0 : i32
    %c0_i32_0 = arith.constant 0 : i32
    %c0_i32_1 = arith.constant 0 : i32
    return %c0_i32, %c0_i32_0 : i32, i32
  }
  func.func @transform_3(%arg0: i32) -> (i32, i32) {
    %c0_i32 = arith.constant 0 : i32
    %c0_i32_0 = arith.constant 0 : i32
    %c0_i32_1 = arith.constant 0 : i32
    return %c0_i32, %c0_i32_0 : i32, i32
  }
  func.func @transform_4(%arg0: i32) -> (i32, i32) {
    %c0_i32 = arith.constant 0 : i32
    %c0_i32_0 = arith.constant 0 : i32
    %c0_i32_1 = arith.constant 0 : i32
    return %c0_i32, %c0_i32_0 : i32, i32
  }
}

</mosaic_0001>

<bundles_post_ra>
// kernel: vit_forward.1
= control target key start
LH: loop header
LB: loop body
LE: loop exit
PB: predicated region body
PF: predicated region fallthrough
CT: control target
= control target key end

     0   :  { %s2846_s0 = inlined_call_operand.vmem [shape: f32[16,256], index: 0, kind: input, shape index: {}]   ;;  %s2847_s1 = inlined_call_operand.vmem [shape: f32[88,256], index: 1, kind: input, shape index: {}]   ;;  %s2848_s2 = inlined_call_operand.vmem [shape: f32[256,32], index: 2, kind: input, shape index: {}]   ;;  %s2849_s3 = inlined_call_operand.vmem [shape: f32[320,128], index: 3, kind: input, shape index: {}]   ;;  %s2850_s4 = inlined_call_operand.hbm [shape: f32[2,128], index: 4, kind: output, shape index: {}]  }
   0x1   :  { %v2315_v0 = vld [vmem:[%s2846_s0 + $0x10] sm:$0xff]  ;;  %v2320_v1 = vld [vmem:[%s2846_s0 + $0x18] sm:$0xff]  ;;  %v2325_v2 = vld [vmem:[%s2846_s0] sm:$0xff] }
   0x2   :  { %v36_v3 = vadd.f32 %v2320_v1, %v2315_v0  ;;  %v2332_v4 = vld [vmem:[%s2846_s0 + $0x8] sm:$0xff]  ;;  %v44_v5 = vmul.f32 %v2315_v0, %v2315_v0  ;;  %v45_v6 = vmul.f32 %v2320_v1, %v2320_v1  ;;  %v42_v7 = vmul.f32 %v2325_v2, %v2325_v2 }
   0x3   :  { %9 = vsyncpa [#allocation3], 0  ;;  %v33_v8 = vadd.f32 %v2332_v4, %v2325_v2  ;;  %v43_v9 = vmul.f32 %v2332_v4, %v2332_v4  ;;  %v133_v12 = vld [vmem:[%s2848_s2 + $0xf8] sm:$0xff]  ;;  %v132_v14 = vld [vmem:[%s2848_s2 + $0xf0] sm:$0xff]  ;;  %v69_v59 = vlaneseq  ;;  %vm212_vm0 = vcmask 261120   ;;  %s2281_s7 = smov 80  }
   0x4   :  { %37 = vadd.xlane.f32.xlu1 %v36_v3  ;;  %v49_v10 = vadd.f32 %v45_v6, %v44_v5  ;;  %1887 = vmatprep.subr.mxu0 %v133_v12  ;;  %v117_v13 = vld [vmem:[%s2848_s2 + $0x78] sm:$0xff]  ;;  %v116_v15 = vld [vmem:[%s2848_s2 + $0x70] sm:$0xff]  ;;  %v131_v16 = vld [vmem:[%s2848_s2 + $0xe8] sm:$0xff]  ;;  %vm391_vm1 = vcmask 130048   ;;  %s2282_s8 = smov 112   ;;  %s2283_s17 = smov 96  }
   0x5   :  { %34 = vadd.xlane.f32.xlu0 %v33_v8  ;;  %v46_v11 = vadd.f32 %v43_v9, %v42_v7  ;;  %1888 = vmatpush3.msra.mxu0 %v117_v13  ;;  %v115_v17 = vld [vmem:[%s2848_s2 + $0x68] sm:$0xff]  ;;  %v130_v18 = vld [vmem:[%s2848_s2 + $0xe0] sm:$0xff]  ;;  %v129_v20 = vld [vmem:[%s2848_s2 + $0xd8] sm:$0xff]  ;;  %v70_v61 = vshrl.u32 %v69_v59, 7  ;;  %vm902_vm2 = vcmask 523264   ;;  %vm1725_vm3 = vcmask 1040384  }
   0x6   :  { %1889 = vmatprep.subr.mxu0 %v132_v14  ;;  %v114_v19 = vld [vmem:[%s2848_s2 + $0x60] sm:$0xff]  ;;  %v113_v21 = vld [vmem:[%s2848_s2 + $0x58] sm:$0xff]  ;;  %v128_v22 = vld [vmem:[%s2848_s2 + $0xd0] sm:$0xff]  ;;  %vm1729_vm4 = vcmask 254976   ;;  %vm2285_vm5 = vmmov 0   ;;  %s2286_s12 = smov [#allocation2]  }
   0x7   :  { %1890 = vmatpush3.msra.mxu0 %v116_v15  ;;  %v112_v23 = vld [vmem:[%s2848_s2 + $0x50] sm:$0xff]  ;;  %v127_v24 = vld [vmem:[%s2848_s2 + $0xc8] sm:$0xff]  ;;  %v126_v26 = vld [vmem:[%s2848_s2 + $0xc0] sm:$0xff]  ;;  %v75_v62 = vsub.s32 1, %v70_v61  ;;  %v71_v3 = vsub.s32 0, %v70_v61  ;;  %s1833_s13 = sshll.u32 %s2286_s12, 4  ;;  %s1834_s13 = int_to_ptr.vmem [resolvable:$true] %s1833_s13 }
   0x8   :  { %50 = vadd.xlane.f32.xlu1 %v49_v10  ;;  %1891 = vmatprep.subr.mxu0 %v131_v16  ;;  %v111_v25 = vld [vmem:[%s2848_s2 + $0x48] sm:$0xff]  ;;  %v110_v27 = vld [vmem:[%s2848_s2 + $0x40] sm:$0xff]  ;;  %v125_v28 = vld [vmem:[%s2848_s2 + $0xb8] sm:$0xff]  ;;  %s2259_s14 = scalar_lea.vmem %s1834_s13, 32  ;;  %p2264_p1 = scmp.lt.s32.totalorder %s1834_s13, %s1834_s13 }
   0x9   :  { %47 = vadd.xlane.f32.xlu0 %v46_v11  ;;  %1892 = vmatpush3.msra.mxu0 %v115_v17  ;;  %v109_v29 = vld [vmem:[%s2848_s2 + $0x38] sm:$0xff]  ;;  %v124_v30 = vld [vmem:[%s2848_s2 + $0xb0] sm:$0xff]  ;;  %v123_v32 = vld [vmem:[%s2848_s2 + $0xa8] sm:$0xff]  ;;  %p2260_p0 = scmp.ne.s32.totalorder %s1834_s13, %s2259_s14  ;;  %p2265_p2 = scmp.lt.s32.totalorder %s2259_s14, %s2259_s14 }
   0xa   :  { %1893 = vmatprep.subr.mxu0 %v130_v18  ;;  %v108_v31 = vld [vmem:[%s2848_s2 + $0x30] sm:$0xff]  ;;  %v107_v33 = vld [vmem:[%s2848_s2 + $0x28] sm:$0xff]  ;;  %v122_v34 = vld [vmem:[%s2848_s2 + $0xa0] sm:$0xff] }
   0xb   :  { %1894 = vmatpush3.msra.mxu0 %v114_v19  ;;  %v106_v35 = vld [vmem:[%s2848_s2 + $0x20] sm:$0xff]  ;;  %v121_v36 = vld [vmem:[%s2848_s2 + $0x98] sm:$0xff]  ;;  %v120_v38 = vld [vmem:[%s2848_s2 + $0x90] sm:$0xff]  ;;  %p2266_p3 = por %p2265_p2, %p2264_p1 }
   0xc   :  { %1895 = vmatprep.subr.mxu0 %v129_v20  ;;  %v105_v37 = vld [vmem:[%s2848_s2 + $0x18] sm:$0xff]  ;;  %v104_v39 = vld [vmem:[%s2848_s2 + $0x10] sm:$0xff]  ;;  %v119_v40 = vld [vmem:[%s2848_s2 + $0x88] sm:$0xff] }
   0xd   :  { %1896 = vmatpush3.msra.mxu0 %v113_v21  ;;  %v103_v41 = vld [vmem:[%s2848_s2 + $0x8] sm:$0xff]  ;;  %v118_v42 = vld [vmem:[%s2848_s2 + $0x80] sm:$0xff]  ;;  %p2267_p4 = pnand %p2266_p3, %p2260_p0 }
   0xe   :  { %1897 = vmatprep.subr.mxu0 %v128_v22  ;;  %v102_v43 = vld [vmem:[%s2848_s2] sm:$0xff] }
   0xf   :  { %1898 = vmatpush3.msra.mxu0 %v112_v23  ;;  %v30_v63 = vld [vmem:[%s2847_s1] ss:$8 sm:$0x3]  ;;  %v1841_v6 = vld [vmem:[%s2847_s1 + $0x1] ss:$8 sm:$0x3] }
  0x10   :  { %1899 = vmatprep.subr.mxu0 %v127_v24  ;;  %v76_v5 = vrot.slane %v30_v63, %v75_v62  ;;  %v72_v7 = vrot.slane %v30_v63, %v71_v3  ;;  %v91_v11 = vrot.slane %v1841_v6, %v71_v3  ;;  %v95_v12 = vrot.slane %v1841_v6, %v75_v62  ;;  %v211_v59 = vld [vmem:[%s2847_s1 + $0x4] ss:$0 sm:$0xff]  ;;  %v20_v62 = vld [vmem:[%s2847_s1 + $0x30] sm:$0xff] }
  0x11   :  { %1900 = vmatpush3.msra.mxu0 %v111_v25  ;;  %v18_v6 = vld [vmem:[%s2847_s1 + $0x10] sm:$0xff] }
  0x12   :  { %1901 = vmatprep.subr.mxu0 %v126_v26 }
  0x13   :  { %1902 = vmatpush3.msra.mxu0 %v110_v27 }
  0x14   :  { %1903 = vmatprep.subr.mxu0 %v125_v28 }
  0x15   :  { %1904 = vmatpush3.msra.mxu0 %v109_v29 }
  0x16   :  { %1905 = vmatprep.subr.mxu0 %v124_v30 }
  0x17   :  { %1906 = vmatpush3.msra.mxu0 %v108_v31 }
  0x18   :  { %1907 = vmatprep.subr.mxu0 %v123_v32 }
  0x19   :  { %1908 = vmatpush3.msra.mxu0 %v107_v33 }
  0x1a   :  { %1909 = vmatprep.subr.mxu0 %v122_v34 }
  0x1b   :  { %1910 = vmatpush3.msra.mxu0 %v106_v35 }
  0x1c   :  { %1911 = vmatprep.subr.mxu0 %v121_v36 }
  0x1d   :  { %1912 = vmatpush3.msra.mxu0 %v105_v37 }
  0x1e   :  { %1913 = vmatprep.subr.mxu0 %v120_v38 }
  0x1f   :  { %1914 = vmatpush3.msra.mxu0 %v104_v39 }
  0x20   :  { %1915 = vmatprep.subr.mxu0 %v119_v40 }
  0x21   :  { %1916 = vmatpush3.msra.mxu0 %v103_v41 }
  0x22   :  { %1917 = vmatprep.subr.mxu0 %v118_v42 }
  0x23   :  { %1918 = vmatpush3.msra.mxu0 %v102_v43 }
  0x8d   :  { %v38_v44 = vpop.xlane.xlu1 %37 }
  0x8e   :  { %v41_v45 = vmul.f32 0.00390625, %v38_v44  ;;  %v35_v46 = vpop.xlane.xlu0 %34 }
  0x8f   :  { %v40_v47 = vmul.f32 0.00390625, %v35_v46 }
  0x90   :  { %v55_v48 = vmul.f32 %v41_v45, %v41_v45  ;;  %v67_v10 = vsub.f32 %v2320_v1, %v41_v45  ;;  %v66_v22 = vsub.f32 %v2315_v0, %v41_v45 }
  0x91   :  { %v51_v49 = vpop.xlane.xlu1 %50  ;;  %v54_v52 = vmul.f32 %v40_v47, %v40_v47  ;;  %v64_v14 = vsub.f32 %v2325_v2, %v40_v47  ;;  %v65_v15 = vsub.f32 %v2332_v4, %v40_v47  ;;  %v134_v4 = vld [vmem:[%s2847_s1 + $0x2] ss:$0 sm:$0xff] }
  0x92   :  { %v53_v50 = vmul.f32 0.00390625, %v51_v49  ;;  %v48_v51 = vpop.xlane.xlu0 %47 }
  0x93   :  { %v52_v53 = vmul.f32 0.00390625, %v48_v51 }
  0x94   :  { %v57_v54 = vsub.f32 %v53_v50, %v55_v48 }
  0x95   :  { %v56_v55 = vsub.f32 %v52_v53, %v54_v52 }
  0x96   :  { %v59_v56 = vmax.f32 %v57_v54, 0.0 }
  0x97   :  { %v58_v57 = vmax.f32 %v56_v55, 0.0  ;;  %v210_v55 = vld [vmem:[%s2847_s1 + $0x3] ss:$0 sm:$0xff] }
  0x98   :  { %v61_v58 = vadd.f32 1e-05, %v59_v56 }
  0x99   :  { %v60_v60 = vadd.f32 1e-05, %v58_v57 }
  0x9a   :  { %2193 = vrsqrt.f32 %v61_v58 }
  0x9b   :  { %2195 = vrsqrt.f32 %v60_v60 }
  0xa7   :  { %v2194_v8 = vpop.eup %2193 }
  0xa8   :  { %v2196_v9 = vpop.eup %2195  ;;  %v82_v13 = vmul.f32 %v2194_v8, %v76_v5  ;;  %v81_v18 = vmul.f32 %v2194_v8, %v72_v7 }
  0xa9   :  { %v80_v16 = vmul.f32 %v2196_v9, %v76_v5  ;;  %v79_v17 = vmul.f32 %v2196_v9, %v72_v7  ;;  %v21_v9 = vld [vmem:[%s2847_s1 + $0x40] sm:$0xff] }
  0xaa   :  { %v86_v21 = vmul.f32 %v82_v13, %v67_v10  ;;  %v85_v25 = vmul.f32 %v81_v18, %v66_v22  ;;  %v294_v22 = vld [vmem:[%s2849_s3 + $0x10] sm:$0xff] }
  0xab   :  { %v84_v19 = vmul.f32 %v80_v16, %v65_v15  ;;  %v83_v20 = vmul.f32 %v79_v17, %v64_v14 }
  0xac   :  { %v101_v1 = vadd.f32 %v95_v12, %v86_v21  ;;  %v100_v26 = vadd.f32 %v91_v11, %v85_v25  ;;  %v295_v21 = vld [vmem:[%s2849_s3 + $0x18] sm:$0xff] }
  0xad   :  { %v99_v23 = vadd.f32 %v95_v12, %v84_v19  ;;  %v98_v24 = vadd.f32 %v91_v11, %v83_v20  ;;  %v19_v12 = vld [vmem:[%s2847_s1 + $0x20] sm:$0xff]  ;;  %2018 = vmatprep.subr.mxu1 %v295_v21 }
  0xae   :  { %2019 = vmatpush3.msra.mxu1 %v295_v21 }
  0xaf   :  { %199 = vmatprep.mubr.f32.mxu0 %v99_v23  ;;  %v293_v23 = vld [vmem:[%s2849_s3 + $0x8] sm:$0xff]  ;;  %2020 = vmatprep.subr.mxu1 %v294_v22 }
  0xb0   :  { %200 = vmatmul.mubr.f32.vlgmr.msra.gmra.mxu0 %v98_v24  ;;  %2021 = vmatpush3.msra.mxu1 %v294_v22  ;;  %v292_v24 = vld [vmem:[%s2849_s3] sm:$0xff] }
  0xb1   :  { %204 = vmatprep.mubr.f32.mxu0 %v101_v1  ;;  %2022 = vmatprep.subr.mxu1 %v293_v23 }
  0xb2   :  { %2023 = vmatpush3.msra.mxu1 %v293_v23 }
  0xb3   :  { %2024 = vmatprep.subr.mxu1 %v292_v24 }
  0xb4   :  { %205 = vmatmul.mubr.f32.gmra.mxu0 %v100_v26  ;;  %2025 = vmatpush3.msra.mxu1 %v292_v24 }
 0x170   :  { %v1919_v2 = vpop.f32.mrf.mxu0 }
 0x172   :  { %v1920_v27 = vpop.f32.mrf.mxu0 }
 0x173   :  { %v1921_v28 = vadd.f32 %v1920_v27, %v1919_v2 }
 0x174   :  { %v1922_v29 = vpop.f32.mrf.mxu0 }
 0x175   :  { %v202_v30 = vadd.f32 %v1921_v28, %v134_v4 }
 0x176   :  { %v1923_v0 = vpop.f32.mrf.mxu0 }
 0x177   :  { %v1924_v31 = vadd.f32 %v1923_v0, %v1922_v29  ;;  %v213_v32 = vsel %vm212_vm0, %v202_v30, 0.0  ;;  %v222_v33 = vmul.f32 %v202_v30, %v202_v30 }
 0x178   :  { %214 = vadd.xlane.f32.xlu0 %v213_v32 }
 0x179   :  { %v207_v34 = vadd.f32 %v1924_v31, %v134_v4  ;;  %v224_v36 = vsel %vm212_vm0, %v222_v33, 0.0 }
 0x17b   :  { %v216_v35 = vsel %vm212_vm0, %v207_v34, 0.0  ;;  %v223_v37 = vmul.f32 %v207_v34, %v207_v34 }
 0x17c   :  { %217 = vadd.xlane.f32.xlu1 %v216_v35  ;;  %225 = vadd.xlane.f32.xlu0 %v224_v36 }
 0x17d   :  { %v227_v38 = vsel %vm212_vm0, %v223_v37, 0.0  ;;  %v254_v37 = vld [vmem:[%s2847_s1 + $0x90] ss:$0 sm:$0xff] }
 0x180   :  { %228 = vadd.xlane.f32.xlu1 %v227_v38 }
 0x201   :  { %v215_v39 = vpop.xlane.xlu0 %214 }
 0x202   :  { %v220_v40 = vmul.f32 0.03125, %v215_v39 }
 0x204   :  { %v232_v43 = vmul.f32 %v220_v40, %v220_v40  ;;  %v242_v57 = vsub.f32 %v202_v30, %v220_v40 }
 0x205   :  { %v218_v41 = vpop.xlane.xlu1 %217  ;;  %v226_v42 = vpop.xlane.xlu0 %225 }
 0x206   :  { %v221_v44 = vmul.f32 0.03125, %v218_v41  ;;  %v230_v45 = vmul.f32 0.03125, %v226_v42  ;;  %v255_v41 = vld [vmem:[%s2847_s1 + $0x91] ss:$0 sm:$0xff] }
 0x208   :  { %v234_v46 = vsub.f32 %v230_v45, %v232_v43  ;;  %v233_v48 = vmul.f32 %v221_v44, %v221_v44  ;;  %v243_v63 = vsub.f32 %v207_v34, %v221_v44 }
 0x209   :  { %v229_v47 = vpop.xlane.xlu1 %228 }
 0x20a   :  { %v236_v49 = vmax.f32 %v234_v46, 0.0  ;;  %v231_v50 = vmul.f32 0.03125, %v229_v47 }
 0x20c   :  { %v238_v51 = vadd.f32 1e-05, %v236_v49  ;;  %v235_v52 = vsub.f32 %v231_v50, %v233_v48 }
 0x20e   :  { %2197 = vrsqrt.f32 %v238_v51  ;;  %v237_v53 = vmax.f32 %v235_v52, 0.0 }
 0x210   :  { %v239_v54 = vadd.f32 1e-05, %v237_v53 }
 0x212   :  { %2199 = vrsqrt.f32 %v239_v54 }
 0x21b   :  { %v2198_v56 = vpop.eup %2197 }
 0x21c   :  { %v244_v58 = vmul.f32 %v2198_v56, %v210_v55 }
 0x21e   :  { %v246_v60 = vmul.f32 %v244_v58, %v242_v57  ;;  %v2542_v57 = vld [vmem:[%s2847_s1 + $0x60] sm:$0xff] }
 0x21f   :  { %v2200_v61 = vpop.eup %2199 }
 0x220   :  { %v248_v3 = vadd.f32 %v246_v60, %v211_v59  ;;  %v245_v5 = vmul.f32 %v2200_v61, %v210_v55  ;;  %v2547_v60 = vld [vmem:[%s2847_s1 + $0x50] sm:$0xff] }
 0x222   :  { %v250_v7 = vmul.f32 %v248_v3, %v20_v62  ;;  %v247_v8 = vmul.f32 %v245_v5, %v243_v63  ;;  %v2553_v3 = vld [vmem:[%s2847_s1 + $0x80] sm:$0xff] }
 0x224   :  { %v2472_v10 = vadd.f32 %v250_v7, %v18_v6  ;;  %v249_v11 = vadd.f32 %v247_v8, %v211_v59 }
 0x226   :  { %v256_v13 = vsel %vm212_vm0, %v2472_v10, 0.0  ;;  %v251_v14 = vmul.f32 %v249_v11, %v21_v9  ;;  %v264_v15 = vmul.f32 %v2472_v10, %v2472_v10  ;;  %v2559_v9 = vld [vmem:[%s2847_s1 + $0x70] sm:$0xff] }
 0x227   :  { %257 = vadd.xlane.f32.xlu0 %v256_v13 }
 0x228   :  { %v2481_v16 = vadd.f32 %v251_v14, %v19_v12  ;;  %v266_v18 = vsel %vm212_vm0, %v264_v15, 0.0 }
 0x22a   :  { %v259_v17 = vsel %vm212_vm0, %v2481_v16, 0.0  ;;  %v265_v19 = vmul.f32 %v2481_v16, %v2481_v16 }
 0x22b   :  { %260 = vadd.xlane.f32.xlu1 %v259_v17  ;;  %267 = vadd.xlane.f32.xlu0 %v266_v18 }
 0x22c   :  { %v269_v20 = vsel %vm212_vm0, %v265_v19, 0.0 }
 0x22f   :  { %270 = vadd.xlane.f32.xlu1 %v269_v20 }
 0x2b0   :  { %v258_v25 = vpop.xlane.xlu0 %257 }
 0x2b1   :  { %v262_v1 = vmul.f32 0.03125, %v258_v25 }
 0x2b3   :  { %v274_v4 = vmul.f32 %v262_v1, %v262_v1  ;;  %v284_v39 = vsub.f32 %v2472_v10, %v262_v1 }
 0x2b4   :  { %v261_v26 = vpop.xlane.xlu1 %260  ;;  %v268_v2 = vpop.xlane.xlu0 %267 }
 0x2b5   :  { %v263_v27 = vmul.f32 0.03125, %v261_v26  ;;  %v272_v28 = vmul.f32 0.03125, %v268_v2  ;;  %v639_v26 = vld [vmem:[%s2849_s3 + $0x28] sm:$0xff] }
 0x2b6   :  { %2057 = vmatprep.subr.mxu0 %v639_v26 }
 0x2b7   :  { %v276_v29 = vsub.f32 %v272_v28, %v274_v4  ;;  %v275_v0 = vmul.f32 %v263_v27, %v263_v27  ;;  %v285_v44 = vsub.f32 %v2481_v16, %v263_v27  ;;  %2058 = vmatpush3.msra.mxu0 %v639_v26 }
 0x2b8   :  { %v271_v30 = vpop.xlane.xlu1 %270 }
 0x2b9   :  { %v278_v31 = vmax.f32 %v276_v29, 0.0  ;;  %v273_v32 = vmul.f32 0.03125, %v271_v30 }
 0x2bb   :  { %v280_v33 = vadd.f32 1e-05, %v278_v31  ;;  %v277_v34 = vsub.f32 %v273_v32, %v275_v0 }
 0x2bd   :  { %2201 = vrsqrt.f32 %v280_v33  ;;  %v279_v35 = vmax.f32 %v277_v34, 0.0 }
 0x2bf   :  { %v281_v36 = vadd.f32 1e-05, %v279_v35 }
 0x2c1   :  { %2203 = vrsqrt.f32 %v281_v36 }
 0x2ca   :  { %v2202_v38 = vpop.eup %2201 }
 0x2cb   :  { %v286_v40 = vmul.f32 %v2202_v38, %v254_v37 }
 0x2cd   :  { %v288_v42 = vmul.f32 %v286_v40, %v284_v39  ;;  %v638_v40 = vld [vmem:[%s2849_s3 + $0x20] sm:$0xff] }
 0x2ce   :  { %v2204_v43 = vpop.eup %2203  ;;  %2059 = vmatprep.subr.mxu0 %v638_v40 }
 0x2cf   :  { %v287_v45 = vmul.f32 %v2204_v43, %v254_v37  ;;  %v290_v46 = vadd.f32 %v288_v42, %v255_v41  ;;  %2060 = vmatpush3.msra.mxu0 %v638_v40  ;;  %v897_v40 = vld [vmem:[%s2849_s3 + $0x68] sm:$0xff] }
 0x2d1   :  { %v289_v47 = vmul.f32 %v287_v45, %v285_v44  ;;  %2026 = vmatprep.mubr.msk.f32.mxu1 %vm212_vm0, %v290_v46 }
 0x2d3   :  { %v291_v48 = vadd.f32 %v289_v47, %v255_v41 }
 0x2d5   :  { %2027 = vmatmul.mubr.msk.f32.vlgmr.msra.gmra.mxu1 %vm212_vm0, %v291_v48 }
 0x395   :  { %v2511_v49 = vpop.f32.mrf.mxu1 }
 0x396   :  { %381 = vrot.lane.b32.xlu0 %v2511_v49, %s2281_s7 }
 0x397   :  { %v2515_v50 = vpop.f32.mrf.mxu1 }
 0x398   :  { %379 = vrot.lane.b32.xlu1 %v2515_v50, %s2281_s7  ;;  %2037 = vmatprep.mubr.msk.f32.mxu1 %vm391_vm1, %v2515_v50 }
 0x39a   :  { %385 = vrot.lane.b32.xlu0 %v2511_v49, %s2282_s8 }
 0x408   :  { %v382_v51 = vpop.permute.xlu0 %381 }
 0x409   :  { %389 = vrot.lane.b32.xlu1 %v382_v51, %s2282_s8 }
 0x40a   :  { %v380_v52 = vpop.permute.xlu1 %379 }
 0x40c   :  { %v386_v55 = vpop.permute.xlu0 %385 }
 0x40d   :  { %387 = vrot.lane.b32.xlu1 %v380_v52, %s2282_s8 }
 0x411   :  { %383 = vrot.lane.b32.xlu1 %v2515_v50, %s2282_s8 }
 0x47b   :  { %v390_v53 = vpop.permute.xlu1 %389 }
 0x47c   :  { %2029 = vmatprep.subr.msk.mxu1 %vm391_vm1, %v390_v53 }
 0x47d   :  { %2030 = vmatpush3.xpose.msk.msra.mxu1 %vm391_vm1, %v390_v53 }
 0x47f   :  { %v388_v54 = vpop.permute.xlu1 %387 }
 0x480   :  { %2031 = vmatprep.subr.msk.mxu1 %vm391_vm1, %v388_v54 }
 0x481   :  { %2032 = vmatpush3.xpose.msk.msra.mxu1 %vm391_vm1, %v388_v54 }
 0x482   :  { %2033 = vmatprep.subr.msk.mxu1 %vm391_vm1, %v386_v55 }
 0x483   :  { %v384_v56 = vpop.permute.xlu1 %383 }
 0x485   :  { %2034 = vmatpush3.xpose.msk.msra.mxu1 %vm391_vm1, %v386_v55 }
 0x486   :  { %2035 = vmatprep.subr.msk.mxu1 %vm391_vm1, %v384_v56 }
 0x489   :  { %2036 = vmatpush3.xpose.msk.msra.mxu1 %vm391_vm1, %v384_v56 }
 0x48c   :  { %2038 = vmatmul.mubr.msk.f32.vlgmr.msra.gmra.mxu1 %vm391_vm1, %v2511_v49 }
 0x48d   :  { %2040 = vmatprep.mubr.msk.f32.mxu1 %vm391_vm1, %v380_v52 }
 0x490   :  { %2041 = vmatmul.mubr.msk.f32.gmra.mxu1 %vm391_vm1, %v382_v51 }
 0x54c   :  { %v2039_v58 = vpop.f32.mrf.mxu1 }
 0x54d   :  { %v494_v59 = vmul.f32 0.25, %v2039_v58 }
 0x54e   :  { %v474_v61 = vpop.f32.mrf.mxu1 }
 0x54f   :  { %v498_v62 = vadd.f32 %v494_v59, %v2542_v57  ;;  %v493_v63 = vmul.f32 0.25, %v474_v61 }
 0x550   :  { %v2042_v5 = vpop.f32.mrf.mxu1 }
 0x551   :  { %v503_v6 = vmul.f32 1.442695, %v498_v62  ;;  %v497_v7 = vadd.f32 %v493_v63, %v2547_v60  ;;  %v496_v8 = vmul.f32 0.25, %v2042_v5  ;;  %v793_v5 = vld [vmem:[%s2849_s3 + $0x48] sm:$0xff] }
 0x552   :  { %v484_v11 = vpop.f32.mrf.mxu1 }
 0x553   :  { %2205 = vpow2.f32 %v503_v6  ;;  %v501_v12 = vmul.f32 1.442695, %v497_v7  ;;  %v500_v13 = vadd.f32 %v496_v8, %v2553_v3  ;;  %v495_v14 = vmul.f32 0.25, %v484_v11  ;;  %v792_v6 = vld [vmem:[%s2849_s3 + $0x40] sm:$0xff]  ;;  %v791_v7 = vld [vmem:[%s2849_s3 + $0x38] sm:$0xff]  ;;  %v790_v8 = vld [vmem:[%s2849_s3 + $0x30] sm:$0xff] }
 0x555   :  { %2207 = vpow2.f32 %v501_v12  ;;  %v507_v15 = vmul.f32 1.442695, %v500_v13  ;;  %v499_v17 = vadd.f32 %v495_v14, %v2559_v9 }
 0x557   :  { %2209 = vpow2.f32 %v507_v15  ;;  %v505_v18 = vmul.f32 1.442695, %v499_v17 }
 0x559   :  { %2211 = vpow2.f32 %v505_v18 }
 0x560   :  { %v2206_v19 = vpop.eup %2205 }
 0x561   :  { %v512_v20 = vsel %vm212_vm0, %v2206_v19, 0.0 }
 0x562   :  { %v2208_v21 = vpop.eup %2207  ;;  %513 = vadd.xlane.f32.xlu1 %v512_v20 }
 0x563   :  { %v509_v22 = vsel %vm212_vm0, %v2208_v21, 0.0 }
 0x564   :  { %v2210_v23 = vpop.eup %2209  ;;  %510 = vadd.xlane.f32.xlu0 %v509_v22 }
 0x565   :  { %v518_v24 = vsel %vm212_vm0, %v2210_v23, 0.0 }
 0x566   :  { %v2212_v25 = vpop.eup %2211 }
 0x567   :  { %v515_v1 = vsel %vm212_vm0, %v2212_v25, 0.0 }
 0x568   :  { %519 = vadd.xlane.f32.xlu0 %v518_v24 }
 0x56c   :  { %516 = vadd.xlane.f32.xlu0 %v515_v1 }
 0x573   :  { %533 = vrot.lane.b32.xlu1 %v380_v52, %s2283_s17 }
 0x577   :  { %531 = vrot.lane.b32.xlu1 %v2511_v49, %s2283_s17  ;;  %v737_v49 = vld [vmem:[%s2847_s1 + $0x92] ss:$0 sm:$0xff] }
 0x57b   :  { %529 = vrot.lane.b32.xlu1 %v2515_v50, %s2283_s17 }
 0x582   :  { %535 = vrot.lane.b32.xlu0 %v382_v51, %s2283_s17 }
 0x5eb   :  { %v514_v2 = vpop.xlane.xlu1 %513 }
 0x5ed   :  { %v511_v4 = vpop.xlane.xlu0 %510 }
 0x5ee   :  { %2213 = vrcp.f32 %v511_v4 }
 0x5ef   :  { %2215 = vrcp.f32 %v514_v2  ;;  %v534_v28 = vpop.permute.xlu1 %533  ;;  %v752_v2 = vld [vmem:[%s2847_s1 + $0x93] ss:$0 sm:$0xff] }
 0x5f1   :  { %v520_v27 = vpop.xlane.xlu0 %519 }
 0x5f2   :  { %2217 = vrcp.f32 %v520_v27 }
 0x5f3   :  { %v532_v30 = vpop.permute.xlu1 %531 }
 0x5f5   :  { %v517_v29 = vpop.xlane.xlu0 %516 }
 0x5f6   :  { %2219 = vrcp.f32 %v517_v29  ;;  %v753_v29 = vld [vmem:[%s2847_s1 + $0x94] ss:$0 sm:$0xff] }
 0x5f7   :  { %v530_v34 = vpop.permute.xlu1 %529 }
 0x5f9   :  { %v536_v0 = vpop.permute.xlu0 %535 }
 0x5fa   :  { %2043 = vmatprep.subr.mxu1 %v536_v0 }
 0x5fb   :  { %v2214_v31 = vpop.eup %2213  ;;  %2044 = vmatpush3.msra.mxu1 %v536_v0 }
 0x5fc   :  { %2045 = vmatprep.subr.mxu1 %v534_v28  ;;  %v525_v32 = vmul.f32 %v2214_v31, %v2208_v21  ;;  %v2216_v33 = vpop.eup %2215 }
 0x5fd   :  { %2046 = vmatpush3.msra.mxu1 %v534_v28  ;;  %v526_v35 = vmul.f32 %v2216_v33, %v2206_v19 }
 0x5fe   :  { %2047 = vmatprep.subr.mxu1 %v532_v30  ;;  %2051 = vmatprep.mubr.msk.f32.mxu1 %vm212_vm0, %v525_v32 }
 0x5ff   :  { %2048 = vmatpush3.msra.mxu1 %v532_v30  ;;  %v2218_v36 = vpop.eup %2217 }
 0x600   :  { %2049 = vmatprep.subr.mxu1 %v530_v34  ;;  %v528_v39 = vmul.f32 %v2218_v36, %v2210_v23  ;;  %v901_v36 = vld [vmem:[%s2849_s3 + $0x88] sm:$0xff] }
 0x601   :  { %2050 = vmatpush3.msra.mxu1 %v530_v34  ;;  %2078 = vmatprep.subr.mxu0 %v901_v36 }
 0x602   :  { %2052 = vmatmul.mubr.msk.f32.vlgmr.msra.gmra.mxu1 %vm212_vm0, %v526_v35  ;;  %2067 = vmatprep.subr.mxu1 %v793_v5 }
 0x603   :  { %v2220_v37 = vpop.eup %2219  ;;  %2068 = vmatpush3.msra.mxu1 %v793_v5 }
 0x604   :  { %v527_v38 = vmul.f32 %v2220_v37, %v2212_v25  ;;  %2069 = vmatprep.subr.mxu1 %v792_v6  ;;  %v900_v37 = vld [vmem:[%s2849_s3 + $0x80] sm:$0xff] }
 0x605   :  { %2070 = vmatpush3.msra.mxu1 %v792_v6 }
 0x606   :  { %2054 = vmatprep.mubr.msk.f32.mxu1 %vm212_vm0, %v527_v38  ;;  %2071 = vmatprep.subr.mxu1 %v791_v7  ;;  %v899_v38 = vld [vmem:[%s2849_s3 + $0x78] sm:$0xff] }
 0x607   :  { %2055 = vmatmul.mubr.msk.f32.gmra.mxu1 %vm212_vm0, %v528_v39  ;;  %v898_v39 = vld [vmem:[%s2849_s3 + $0x70] sm:$0xff] }
 0x608   :  { %2072 = vmatpush3.msra.mxu1 %v791_v7 }
 0x609   :  { %2073 = vmatprep.subr.mxu1 %v790_v8 }
 0x60a   :  { %2074 = vmatpush3.msra.mxu1 %v790_v8 }
 0x6c2   :  { %v2053_v41 = vpop.f32.mrf.mxu1 }
 0x6c4   :  { %v619_v42 = vpop.f32.mrf.mxu1 }
 0x6c5   :  { %2061 = vmatprep.mubr.msk.f32.mxu0 %vm391_vm1, %v619_v42  ;;  %v895_v42 = vld [vmem:[%s2849_s3 + $0x58] sm:$0xff] }
 0x6c6   :  { %2062 = vmatmul.mubr.msk.f32.vlgmr.msra.gmra.mxu0 %vm391_vm1, %v2053_v41  ;;  %v896_v41 = vld [vmem:[%s2849_s3 + $0x60] sm:$0xff] }
 0x6c7   :  { %v2056_v43 = vpop.f32.mrf.mxu1  ;;  %2079 = vmatpush3.msra.mxu0 %v901_v36 }
 0x6c8   :  { %2080 = vmatprep.subr.mxu0 %v900_v37 }
 0x6c9   :  { %v629_v44 = vpop.f32.mrf.mxu1  ;;  %2081 = vmatpush3.msra.mxu0 %v900_v37 }
 0x6ca   :  { %2064 = vmatprep.mubr.msk.f32.mxu0 %vm391_vm1, %v629_v44  ;;  %2082 = vmatprep.subr.mxu0 %v899_v38  ;;  %v794_v44 = vld [vmem:[%s2847_s1 + $0x95] ss:$0 sm:$0xff] }
 0x6cb   :  { %2065 = vmatmul.mubr.msk.f32.gmra.mxu0 %vm391_vm1, %v2056_v43  ;;  %v894_v43 = vld [vmem:[%s2849_s3 + $0x50] sm:$0xff] }
 0x6cc   :  { %2083 = vmatpush3.msra.mxu0 %v899_v38 }
 0x6cd   :  { %2084 = vmatprep.subr.mxu0 %v898_v39 }
 0x6ce   :  { %2085 = vmatpush3.msra.mxu0 %v898_v39 }
 0x6cf   :  { %2086 = vmatprep.subr.mxu0 %v897_v40 }
 0x6d0   :  { %2087 = vmatpush3.msra.mxu0 %v897_v40  ;;  %v989_v40 = vld [vmem:[%s2847_s1 + $0xa0] ss:$0 sm:$0xff] }
 0x6d1   :  { %2088 = vmatprep.subr.mxu0 %v896_v41 }
 0x6d2   :  { %2089 = vmatpush3.msra.mxu0 %v896_v41 }
 0x6d3   :  { %2090 = vmatprep.subr.mxu0 %v895_v42 }
 0x6d4   :  { %2091 = vmatpush3.msra.mxu0 %v895_v42 }
 0x6d5   :  { %2092 = vmatprep.subr.mxu0 %v894_v43 }
 0x6d6   :  { %2093 = vmatpush3.msra.mxu0 %v894_v43 }
 0x786   :  { %v2063_v45 = vpop.f32.mrf.mxu0 }
 0x787   :  { %v739_v50 = vadd.f32 %v2063_v45, %v737_v49 }
 0x788   :  { %v718_v46 = vpop.f32.mrf.mxu0 }
 0x789   :  { %v738_v52 = vadd.f32 %v737_v49, %v718_v46 }
 0x78b   :  { %v2066_v47 = vpop.f32.mrf.mxu0 }
 0x78c   :  { %744 = vrot.lane.b32.xlu1 %v2066_v47, %s2283_s17 }
 0x78d   :  { %v728_v48 = vpop.f32.mrf.mxu0 }
 0x78e   :  { %742 = vrot.lane.b32.xlu0 %v728_v48, %s2283_s17 }
 0x7fe   :  { %v745_v51 = vpop.permute.xlu1 %744 }
 0x7ff   :  { %v749_v53 = vadd.f32 %v745_v51, %v739_v50 }
 0x800   :  { %v743_v54 = vpop.permute.xlu0 %742 }
 0x801   :  { %v2593_v55 = vadd.f32 %v749_v53, %v2481_v16  ;;  %v748_v56 = vadd.f32 %v743_v54, %v738_v52 }
 0x803   :  { %v2596_v58 = vadd.f32 %v748_v56, %v2472_v10  ;;  %v757_v59 = vsel %vm212_vm0, %v2593_v55, 0.0  ;;  %v763_v16 = vmul.f32 %v2593_v55, %v2593_v55 }
 0x804   :  { %758 = vadd.xlane.f32.xlu1 %v757_v59 }
 0x805   :  { %v754_v61 = vsel %vm212_vm0, %v2596_v58, 0.0  ;;  %v762_v62 = vmul.f32 %v2596_v58, %v2596_v58  ;;  %v767_v10 = vsel %vm212_vm0, %v763_v16, 0.0 }
 0x806   :  { %755 = vadd.xlane.f32.xlu0 %v754_v61 }
 0x807   :  { %v764_v63 = vsel %vm212_vm0, %v762_v62, 0.0 }
 0x80a   :  { %765 = vadd.xlane.f32.xlu0 %v764_v63 }
 0x80e   :  { %768 = vadd.xlane.f32.xlu0 %v767_v10 }
 0x88d   :  { %v759_v13 = vpop.xlane.xlu1 %758 }
 0x88e   :  { %v761_v15 = vmul.f32 0.03125, %v759_v13  ;;  %v986_v13 = vld [vmem:[%s2847_s1 + $0x96] ss:$0 sm:$0xff] }
 0x88f   :  { %v756_v11 = vpop.xlane.xlu0 %755 }
 0x890   :  { %v760_v12 = vmul.f32 0.03125, %v756_v11  ;;  %v773_v21 = vmul.f32 %v761_v15, %v761_v15  ;;  %v783_v31 = vsub.f32 %v2593_v55, %v761_v15 }
 0x892   :  { %v772_v17 = vmul.f32 %v760_v12, %v760_v12  ;;  %v782_v27 = vsub.f32 %v2596_v58, %v760_v12 }
 0x893   :  { %v766_v14 = vpop.xlane.xlu0 %765 }
 0x894   :  { %v770_v18 = vmul.f32 0.03125, %v766_v14 }
 0x896   :  { %v774_v19 = vsub.f32 %v770_v18, %v772_v17 }
 0x897   :  { %v769_v20 = vpop.xlane.xlu0 %768 }
 0x898   :  { %v776_v22 = vmax.f32 %v774_v19, 0.0  ;;  %v771_v23 = vmul.f32 0.03125, %v769_v20 }
 0x89a   :  { %v778_v24 = vadd.f32 1e-05, %v776_v22  ;;  %v775_v25 = vsub.f32 %v771_v23, %v773_v21 }
 0x89c   :  { %2221 = vrsqrt.f32 %v778_v24  ;;  %v777_v1 = vmax.f32 %v775_v25, 0.0  ;;  %v1030_v24 = vld [vmem:[%s2849_s3 + $0xa8] sm:$0xff]  ;;  %v1029_v25 = vld [vmem:[%s2849_s3 + $0xa0] sm:$0xff] }
 0x89d   :  { %2097 = vmatprep.subr.mxu1 %v1030_v24 }
 0x89e   :  { %v779_v26 = vadd.f32 1e-05, %v777_v1  ;;  %v1028_v1 = vld [vmem:[%s2849_s3 + $0x98] sm:$0xff] }
 0x8a0   :  { %2223 = vrsqrt.f32 %v779_v26  ;;  %v1027_v26 = vld [vmem:[%s2849_s3 + $0x90] sm:$0xff] }
 0x8a9   :  { %v2222_v4 = vpop.eup %2221 }
 0x8aa   :  { %v784_v28 = vmul.f32 %v2222_v4, %v752_v2 }
 0x8ac   :  { %v786_v30 = vmul.f32 %v784_v28, %v782_v27 }
 0x8ad   :  { %v2224_v0 = vpop.eup %2223 }
 0x8ae   :  { %v785_v32 = vmul.f32 %v2224_v0, %v752_v2  ;;  %v788_v33 = vadd.f32 %v786_v30, %v753_v29 }
 0x8b0   :  { %v787_v34 = vmul.f32 %v785_v32, %v783_v31  ;;  %2075 = vmatprep.mubr.msk.f32.mxu1 %vm212_vm0, %v788_v33 }
 0x8b2   :  { %v789_v35 = vadd.f32 %v787_v34, %v753_v29 }
 0x8b4   :  { %2076 = vmatmul.mubr.msk.f32.vlgmr.msra.gmra.mxu1 %vm212_vm0, %v789_v35 }
 0x8b5   :  { %2098 = vmatpush3.msra.mxu1 %v1030_v24 }
 0x8b6   :  { %2099 = vmatprep.subr.mxu1 %v1029_v25 }
 0x8b7   :  { %2100 = vmatpush3.msra.mxu1 %v1029_v25 }
 0x8b8   :  { %2101 = vmatprep.subr.mxu1 %v1028_v1 }
 0x8b9   :  { %2102 = vmatpush3.msra.mxu1 %v1028_v1 }
 0x8ba   :  { %2103 = vmatprep.subr.mxu1 %v1027_v26 }
 0x8bb   :  { %2104 = vmatpush3.msra.mxu1 %v1027_v26 }
 0x974   :  { %v2077_v45 = vpop.f32.mrf.mxu1 }
 0x975   :  { %v873_v46 = vadd.f32 %v2077_v45, %v794_v44 }
 0x976   :  { %v867_v47 = vpop.f32.mrf.mxu1 }
 0x977   :  { %v879_v48 = vmul.f32 0.044715, %v873_v46  ;;  %v868_v49 = vadd.f32 %v867_v47, %v794_v44  ;;  %v877_v7 = vmul.f32 0.5, %v873_v46 }
 0x979   :  { %v881_v50 = vmul.f32 %v879_v48, %v873_v46  ;;  %v878_v51 = vmul.f32 0.044715, %v868_v49  ;;  %v876_v5 = vmul.f32 0.5, %v868_v49  ;;  %v990_v48 = vld [vmem:[%s2847_s1 + $0xa1] ss:$0 sm:$0xff] }
 0x97b   :  { %v883_v52 = vmul.f32 %v881_v50, %v873_v46  ;;  %v880_v53 = vmul.f32 %v878_v51, %v868_v49 }
 0x97d   :  { %v885_v54 = vadd.f32 %v883_v52, %v873_v46  ;;  %v882_v56 = vmul.f32 %v880_v53, %v868_v49 }
 0x97f   :  { %v887_v59 = vmul.f32 0.7978846, %v885_v54  ;;  %v884_v61 = vadd.f32 %v882_v56, %v868_v49 }
 0x981   :  { %2225 = vtanh.f32 %v887_v59  ;;  %v886_v62 = vmul.f32 0.7978846, %v884_v61 }
 0x983   :  { %2227 = vtanh.f32 %v886_v62 }
 0x98e   :  { %v2226_v63 = vpop.eup %2225 }
 0x98f   :  { %v891_v10 = vadd.f32 1.0, %v2226_v63 }
 0x990   :  { %v2228_v16 = vpop.eup %2227 }
 0x991   :  { %v890_v6 = vadd.f32 1.0, %v2228_v16  ;;  %v893_v11 = vmul.f32 %v891_v10, %v877_v7 }
 0x993   :  { %v892_v8 = vmul.f32 %v890_v6, %v876_v5 }
 0x995   :  { %2094 = vmatprep.mubr.msk.f32.mxu0 %vm902_vm2, %v892_v8 }
 0x996   :  { %2095 = vmatmul.mubr.msk.f32.vlgmr.msra.gmra.mxu0 %vm902_vm2, %v893_v11 }
 0xa56   :  { %v2096_v12 = vpop.f32.mrf.mxu0 }
 0xa57   :  { %v985_v14 = vadd.f32 %v2096_v12, %v2593_v55 }
 0xa58   :  { %v975_v15 = vpop.f32.mrf.mxu0 }
 0xa59   :  { %v2663_v17 = vadd.f32 %v986_v13, %v985_v14  ;;  %v984_v18 = vadd.f32 %v975_v15, %v2596_v58 }
 0xa5b   :  { %v2666_v19 = vadd.f32 %v986_v13, %v984_v18  ;;  %v994_v20 = vsel %vm212_vm0, %v2663_v17, 0.0  ;;  %v1000_v21 = vmul.f32 %v2663_v17, %v2663_v17 }
 0xa5c   :  { %995 = vadd.xlane.f32.xlu1 %v994_v20 }
 0xa5d   :  { %v991_v22 = vsel %vm212_vm0, %v2666_v19, 0.0  ;;  %v999_v55 = vmul.f32 %v2666_v19, %v2666_v19  ;;  %v1004_v23 = vsel %vm212_vm0, %v1000_v21, 0.0 }
 0xa5e   :  { %992 = vadd.xlane.f32.xlu0 %v991_v22 }
 0xa5f   :  { %v1001_v58 = vsel %vm212_vm0, %v999_v55, 0.0 }
 0xa60   :  { %1005 = vadd.xlane.f32.xlu1 %v1004_v23 }
 0xa62   :  { %1002 = vadd.xlane.f32.xlu0 %v1001_v58 }
 0xae5   :  { %v996_v2 = vpop.xlane.xlu1 %995 }
 0xae6   :  { %v998_v4 = vmul.f32 0.03125, %v996_v2 }
 0xae7   :  { %v993_v27 = vpop.xlane.xlu0 %992 }
 0xae8   :  { %v997_v28 = vmul.f32 0.03125, %v993_v27  ;;  %v1010_v30 = vmul.f32 %v998_v4, %v998_v4  ;;  %v1020_v44 = vsub.f32 %v2663_v17, %v998_v4 }
 0xae9   :  { %v1006_v29 = vpop.xlane.xlu1 %1005 }
 0xaea   :  { %v1008_v0 = vmul.f32 0.03125, %v1006_v29  ;;  %v1009_v32 = vmul.f32 %v997_v28, %v997_v28  ;;  %v1019_v45 = vsub.f32 %v2666_v19, %v997_v28 }
 0xaeb   :  { %v1003_v31 = vpop.xlane.xlu0 %1002 }
 0xaec   :  { %v1012_v33 = vsub.f32 %v1008_v0, %v1010_v30  ;;  %v1007_v34 = vmul.f32 0.03125, %v1003_v31 }
 0xaee   :  { %v1014_v35 = vmax.f32 %v1012_v33, 0.0  ;;  %v1011_v36 = vsub.f32 %v1007_v34, %v1009_v32  ;;  %v1373_v33 = vld [vmem:[%s2849_s3 + $0xb8] sm:$0xff] }
 0xaf0   :  { %v1016_v37 = vadd.f32 1e-05, %v1014_v35  ;;  %v1013_v38 = vmax.f32 %v1011_v36, 0.0 }
 0xaf2   :  { %2229 = vrsqrt.f32 %v1016_v37  ;;  %v1015_v39 = vadd.f32 1e-05, %v1013_v38 }
 0xaf4   :  { %2231 = vrsqrt.f32 %v1015_v39  ;;  %v1372_v39 = vld [vmem:[%s2849_s3 + $0xb0] sm:$0xff] }
 0xaff   :  { %v2230_v41 = vpop.eup %2229 }
 0xb00   :  { %v1022_v42 = vmul.f32 %v2230_v41, %v989_v40 }
 0xb01   :  { %v2232_v43 = vpop.eup %2231 }
 0xb02   :  { %v1021_v46 = vmul.f32 %v2232_v43, %v989_v40  ;;  %v1024_v47 = vmul.f32 %v1022_v42, %v1020_v44 }
 0xb04   :  { %v1023_v49 = vmul.f32 %v1021_v46, %v1019_v45  ;;  %v1026_v51 = vadd.f32 %v1024_v47, %v990_v48 }
 0xb06   :  { %v1025_v50 = vadd.f32 %v1023_v49, %v990_v48  ;;  %v1471_v48 = vld [vmem:[%s2847_s1 + $0xa2] ss:$0 sm:$0xff] }
 0xb08   :  { %2105 = vmatprep.mubr.msk.f32.mxu1 %vm212_vm0, %v1025_v50 }
 0xb09   :  { %2106 = vmatmul.mubr.msk.f32.vlgmr.msra.gmra.mxu1 %vm212_vm0, %v1026_v51 }
 0xbc9   :  { %v2107_v52 = vpop.f32.mrf.mxu1 }
 0xbca   :  { %1116 = vrot.lane.b32.xlu0 %v2107_v52, %s2281_s7 }
 0xbcb   :  { %v1103_v53 = vpop.f32.mrf.mxu1 }
 0xbcc   :  { %1114 = vrot.lane.b32.xlu1 %v1103_v53, %s2281_s7  ;;  %2116 = vmatprep.mubr.msk.f32.mxu1 %vm391_vm1, %v1103_v53 }
 0xbce   :  { %1120 = vrot.lane.b32.xlu0 %v2107_v52, %s2282_s8 }
 0xc3c   :  { %v1117_v54 = vpop.permute.xlu0 %1116 }
 0xc3d   :  { %1124 = vrot.lane.b32.xlu1 %v1117_v54, %s2282_s8 }
 0xc3e   :  { %v1115_v56 = vpop.permute.xlu1 %1114 }
 0xc40   :  { %v1121_v62 = vpop.permute.xlu0 %1120 }
 0xc41   :  { %1122 = vrot.lane.b32.xlu1 %v1115_v56, %s2282_s8 }
 0xc45   :  { %1118 = vrot.lane.b32.xlu1 %v1103_v53, %s2282_s8 }
 0xcaf   :  { %v1125_v59 = vpop.permute.xlu1 %1124 }
 0xcb0   :  { %2108 = vmatprep.subr.msk.mxu1 %vm391_vm1, %v1125_v59 }
 0xcb1   :  { %2109 = vmatpush3.xpose.msk.msra.mxu1 %vm391_vm1, %v1125_v59 }
 0xcb3   :  { %v1123_v61 = vpop.permute.xlu1 %1122 }
 0xcb4   :  { %2110 = vmatprep.subr.msk.mxu1 %vm391_vm1, %v1123_v61 }
 0xcb5   :  { %2111 = vmatpush3.xpose.msk.msra.mxu1 %vm391_vm1, %v1123_v61 }
 0xcb6   :  { %2112 = vmatprep.subr.msk.mxu1 %vm391_vm1, %v1121_v62 }
 0xcb7   :  { %v1119_v63 = vpop.permute.xlu1 %1118 }
 0xcb9   :  { %2113 = vmatpush3.xpose.msk.msra.mxu1 %vm391_vm1, %v1121_v62 }
 0xcba   :  { %2114 = vmatprep.subr.msk.mxu1 %vm391_vm1, %v1119_v63 }
 0xcbd   :  { %2115 = vmatpush3.xpose.msk.msra.mxu1 %vm391_vm1, %v1119_v63 }
 0xcc0   :  { %2117 = vmatmul.mubr.msk.f32.vlgmr.msra.gmra.mxu1 %vm391_vm1, %v2107_v52 }
 0xcc1   :  { %2119 = vmatprep.mubr.msk.f32.mxu1 %vm391_vm1, %v1115_v56 }
 0xcc4   :  { %2120 = vmatmul.mubr.msk.f32.gmra.mxu1 %vm391_vm1, %v1117_v54 }
 0xd80   :  { %v2118_v16 = vpop.f32.mrf.mxu1 }
 0xd81   :  { %v1228_v10 = vmul.f32 0.25, %v2118_v16 }
 0xd82   :  { %v1208_v5 = vpop.f32.mrf.mxu1 }
 0xd83   :  { %v1232_v6 = vadd.f32 %v1228_v10, %v2542_v57  ;;  %v1227_v7 = vmul.f32 0.25, %v1208_v5  ;;  %v1527_v10 = vld [vmem:[%s2849_s3 + $0xd8] sm:$0xff]  ;;  %v1526_v5 = vld [vmem:[%s2849_s3 + $0xd0] sm:$0xff] }
 0xd84   :  { %v2121_v8 = vpop.f32.mrf.mxu1  ;;  %2146 = vmatprep.subr.mxu1 %v1527_v10 }
 0xd85   :  { %v1237_v11 = vmul.f32 1.442695, %v1232_v6  ;;  %v1231_v12 = vadd.f32 %v1227_v7, %v2547_v60  ;;  %v1230_v13 = vmul.f32 0.25, %v2121_v8  ;;  %2147 = vmatpush3.msra.mxu1 %v1527_v10  ;;  %v1525_v6 = vld [vmem:[%s2849_s3 + $0xc8] sm:$0xff]  ;;  %v1524_v7 = vld [vmem:[%s2849_s3 + $0xc0] sm:$0xff] }
 0xd86   :  { %v1218_v14 = vpop.f32.mrf.mxu1  ;;  %2148 = vmatprep.subr.mxu1 %v1526_v5 }
 0xd87   :  { %2233 = vpow2.f32 %v1237_v11  ;;  %v1235_v15 = vmul.f32 1.442695, %v1231_v12  ;;  %v1234_v18 = vadd.f32 %v1230_v13, %v2553_v3  ;;  %v1229_v20 = vmul.f32 0.25, %v1218_v14  ;;  %2149 = vmatpush3.msra.mxu1 %v1526_v5 }
 0xd88   :  { %2150 = vmatprep.subr.mxu1 %v1525_v6 }
 0xd89   :  { %2235 = vpow2.f32 %v1235_v15  ;;  %v1241_v21 = vmul.f32 1.442695, %v1234_v18  ;;  %v1233_v22 = vadd.f32 %v1229_v20, %v2559_v9  ;;  %2151 = vmatpush3.msra.mxu1 %v1525_v6  ;;  %v1719_v6 = vld [vmem:[%s2847_s1 + $0xa6] ss:$0 sm:$0xff] }
 0xd8a   :  { %2152 = vmatprep.subr.mxu1 %v1524_v7 }
 0xd8b   :  { %2237 = vpow2.f32 %v1241_v21  ;;  %v1239_v55 = vmul.f32 1.442695, %v1233_v22  ;;  %2153 = vmatpush3.msra.mxu1 %v1524_v7 }
 0xd8d   :  { %2239 = vpow2.f32 %v1239_v55 }
 0xd94   :  { %v2234_v57 = vpop.eup %2233 }
 0xd95   :  { %v1246_v23 = vsel %vm212_vm0, %v2234_v57, 0.0 }
 0xd96   :  { %v2236_v58 = vpop.eup %2235  ;;  %1247 = vadd.xlane.f32.xlu1 %v1246_v23 }
 0xd97   :  { %v1243_v60 = vsel %vm212_vm0, %v2236_v58, 0.0 }
 0xd98   :  { %v2238_v24 = vpop.eup %2237  ;;  %1244 = vadd.xlane.f32.xlu0 %v1243_v60 }
 0xd99   :  { %v1252_v25 = vsel %vm212_vm0, %v2238_v24, 0.0 }
 0xd9a   :  { %v2240_v3 = vpop.eup %2239 }
 0xd9b   :  { %v1249_v1 = vsel %vm212_vm0, %v2240_v3, 0.0 }
 0xd9c   :  { %1253 = vadd.xlane.f32.xlu0 %v1252_v25  ;;  %v1486_v25 = vld [vmem:[%s2847_s1 + $0xa3] ss:$0 sm:$0xff] }
 0xda0   :  { %1250 = vadd.xlane.f32.xlu0 %v1249_v1 }
 0xda7   :  { %1267 = vrot.lane.b32.xlu1 %v1115_v56, %s2283_s17 }
 0xdab   :  { %1265 = vrot.lane.b32.xlu1 %v2107_v52, %s2283_s17 }
 0xdaf   :  { %1263 = vrot.lane.b32.xlu1 %v1103_v53, %s2283_s17 }
 0xdb6   :  { %1269 = vrot.lane.b32.xlu0 %v1117_v54, %s2283_s17 }
 0xe1f   :  { %v1248_v9 = vpop.xlane.xlu1 %1247 }
 0xe21   :  { %v1245_v26 = vpop.xlane.xlu0 %1244 }
 0xe22   :  { %2241 = vrcp.f32 %v1245_v26  ;;  %v1487_v26 = vld [vmem:[%s2847_s1 + $0xa4] ss:$0 sm:$0xff] }
 0xe23   :  { %2243 = vrcp.f32 %v1248_v9  ;;  %v1268_v4 = vpop.permute.xlu1 %1267 }
 0xe25   :  { %v1254_v2 = vpop.xlane.xlu0 %1253 }
 0xe26   :  { %2245 = vrcp.f32 %v1254_v2 }
 0xe27   :  { %v1266_v28 = vpop.permute.xlu1 %1265 }
 0xe29   :  { %v1251_v27 = vpop.xlane.xlu0 %1250 }
 0xe2a   :  { %2247 = vrcp.f32 %v1251_v27 }
 0xe2b   :  { %v1264_v32 = vpop.permute.xlu1 %1263 }
 0xe2d   :  { %v1270_v29 = vpop.permute.xlu0 %1269 }
 0xe2e   :  { %2122 = vmatprep.subr.mxu0 %v1270_v29 }
 0xe2f   :  { %v2242_v30 = vpop.eup %2241  ;;  %2123 = vmatpush3.msra.mxu0 %v1270_v29 }
 0xe30   :  { %2124 = vmatprep.subr.mxu0 %v1268_v4  ;;  %v1259_v0 = vmul.f32 %v2242_v30, %v2236_v58  ;;  %v2244_v31 = vpop.eup %2243 }
 0xe31   :  { %2125 = vmatpush3.msra.mxu0 %v1268_v4  ;;  %v1260_v34 = vmul.f32 %v2244_v31, %v2234_v57  ;;  %v1635_v31 = vld [vmem:[%s2849_s3 + $0x118] sm:$0xff] }
 0xe32   :  { %2126 = vmatprep.subr.mxu0 %v1266_v28  ;;  %2130 = vmatprep.mubr.msk.f32.mxu0 %vm212_vm0, %v1259_v0 }
 0xe33   :  { %2127 = vmatpush3.msra.mxu0 %v1266_v28  ;;  %v2246_v35 = vpop.eup %2245 }
 0xe34   :  { %2128 = vmatprep.subr.mxu0 %v1264_v32  ;;  %v1262_v38 = vmul.f32 %v2246_v35, %v2238_v24  ;;  %v1631_v35 = vld [vmem:[%s2849_s3 + $0xf8] sm:$0xff] }
 0xe35   :  { %2129 = vmatpush3.msra.mxu0 %v1264_v32  ;;  %v1634_v32 = vld [vmem:[%s2849_s3 + $0x110] sm:$0xff] }
 0xe36   :  { %2131 = vmatmul.mubr.msk.f32.vlgmr.msra.gmra.mxu0 %vm212_vm0, %v1260_v34  ;;  %2136 = vmatprep.subr.mxu0 %v1373_v33  ;;  %v1632_v34 = vld [vmem:[%s2849_s3 + $0x100] sm:$0xff] }
 0xe37   :  { %v2248_v36 = vpop.eup %2247  ;;  %2137 = vmatpush3.msra.mxu0 %v1373_v33  ;;  %v1633_v33 = vld [vmem:[%s2849_s3 + $0x108] sm:$0xff] }
 0xe38   :  { %v1261_v37 = vmul.f32 %v2248_v36, %v2240_v3  ;;  %2138 = vmatprep.subr.mxu0 %v1372_v39  ;;  %v1630_v36 = vld [vmem:[%s2849_s3 + $0xf0] sm:$0xff] }
 0xe39   :  { %2139 = vmatpush3.msra.mxu0 %v1372_v39  ;;  %v1528_v39 = vld [vmem:[%s2847_s1 + $0xa5] ss:$0 sm:$0xff] }
 0xe3a   :  { %2133 = vmatprep.mubr.msk.f32.mxu0 %vm212_vm0, %v1261_v37  ;;  %2157 = vmatprep.subr.mxu0 %v1635_v31  ;;  %v1629_v37 = vld [vmem:[%s2849_s3 + $0xe8] sm:$0xff] }
 0xe3b   :  { %2134 = vmatmul.mubr.msk.f32.gmra.mxu0 %vm212_vm0, %v1262_v38  ;;  %v1628_v38 = vld [vmem:[%s2849_s3 + $0xe0] sm:$0xff] }
 0xef6   :  { %v2132_v40 = vpop.f32.mrf.mxu0 }
 0xef8   :  { %v1353_v41 = vpop.f32.mrf.mxu0 }
 0xef9   :  { %2140 = vmatprep.mubr.msk.f32.mxu0 %vm391_vm1, %v1353_v41 }
 0xefa   :  { %2141 = vmatmul.mubr.msk.f32.vlgmr.msra.gmra.mxu0 %vm391_vm1, %v2132_v40 }
 0xefb   :  { %v2135_v42 = vpop.f32.mrf.mxu0  ;;  %2158 = vmatpush3.msra.mxu0 %v1635_v31 }
 0xefc   :  { %2159 = vmatprep.subr.mxu0 %v1634_v32 }
 0xefd   :  { %v1363_v43 = vpop.f32.mrf.mxu0  ;;  %2160 = vmatpush3.msra.mxu0 %v1634_v32 }
 0xefe   :  { %2143 = vmatprep.mubr.msk.f32.mxu0 %vm391_vm1, %v1363_v43  ;;  %2161 = vmatprep.subr.mxu0 %v1633_v33 }
 0xeff   :  { %2144 = vmatmul.mubr.msk.f32.gmra.mxu0 %vm391_vm1, %v2135_v42 }
 0xf00   :  { %2162 = vmatpush3.msra.mxu0 %v1633_v33 }
 0xf01   :  { %2163 = vmatprep.subr.mxu0 %v1632_v34 }
 0xf02   :  { %2164 = vmatpush3.msra.mxu0 %v1632_v34 }
 0xf03   :  { %2165 = vmatprep.subr.mxu0 %v1631_v35 }
 0xf04   :  { %2166 = vmatpush3.msra.mxu0 %v1631_v35 }
 0xf05   :  { %2167 = vmatprep.subr.mxu0 %v1630_v36 }
 0xf06   :  { %2168 = vmatpush3.msra.mxu0 %v1630_v36 }
 0xf07   :  { %2169 = vmatprep.subr.mxu0 %v1629_v37 }
 0xf08   :  { %2170 = vmatpush3.msra.mxu0 %v1629_v37 }
 0xf09   :  { %2171 = vmatprep.subr.mxu0 %v1628_v38 }
 0xf0a   :  { %2172 = vmatpush3.msra.mxu0 %v1628_v38 }
 0xfba   :  { %v2142_v44 = vpop.f32.mrf.mxu0 }
 0xfbb   :  { %v1473_v49 = vadd.f32 %v2142_v44, %v1471_v48 }
 0xfbc   :  { %v1452_v45 = vpop.f32.mrf.mxu0 }
 0xfbd   :  { %v1472_v51 = vadd.f32 %v1471_v48, %v1452_v45 }
 0xfbf   :  { %v2145_v46 = vpop.f32.mrf.mxu0 }
 0xfc0   :  { %1478 = vrot.lane.b32.xlu1 %v2145_v46, %s2283_s17 }
 0xfc1   :  { %v1462_v47 = vpop.f32.mrf.mxu0 }
 0xfc2   :  { %1476 = vrot.lane.b32.xlu0 %v1462_v47, %s2283_s17 }
0x1032   :  { %v1479_v50 = vpop.permute.xlu1 %1478 }
0x1033   :  { %v1483_v52 = vadd.f32 %v1479_v50, %v1473_v49 }
0x1034   :  { %v1477_v53 = vpop.permute.xlu0 %1476 }
0x1035   :  { %v2750_v54 = vadd.f32 %v1483_v52, %v2663_v17  ;;  %v1482_v56 = vadd.f32 %v1477_v53, %v1472_v51 }
0x1037   :  { %v2753_v59 = vadd.f32 %v1482_v56, %v2666_v19  ;;  %v1491_v61 = vsel %vm212_vm0, %v2750_v54, 0.0  ;;  %v1497_v17 = vmul.f32 %v2750_v54, %v2750_v54 }
0x1038   :  { %1492 = vadd.xlane.f32.xlu1 %v1491_v61 }
0x1039   :  { %v1488_v62 = vsel %vm212_vm0, %v2753_v59, 0.0  ;;  %v1496_v63 = vmul.f32 %v2753_v59, %v2753_v59  ;;  %v1501_v19 = vsel %vm212_vm0, %v1497_v17, 0.0 }
0x103a   :  { %1489 = vadd.xlane.f32.xlu0 %v1488_v62 }
0x103b   :  { %v1498_v16 = vsel %vm212_vm0, %v1496_v63, 0.0 }
0x103e   :  { %1499 = vadd.xlane.f32.xlu0 %v1498_v16 }
0x1042   :  { %1502 = vadd.xlane.f32.xlu0 %v1501_v19 }
0x10c1   :  { %v1493_v12 = vpop.xlane.xlu1 %1492 }
0x10c2   :  { %v1495_v14 = vmul.f32 0.03125, %v1493_v12 }
0x10c3   :  { %v1490_v8 = vpop.xlane.xlu0 %1489 }
0x10c4   :  { %v1494_v11 = vmul.f32 0.03125, %v1490_v8  ;;  %v1507_v22 = vmul.f32 %v1495_v14, %v1495_v14  ;;  %v1517_v27 = vsub.f32 %v2750_v54, %v1495_v14 }
0x10c6   :  { %v1506_v15 = vmul.f32 %v1494_v11, %v1494_v11  ;;  %v1516_v1 = vsub.f32 %v2753_v59, %v1494_v11 }
0x10c7   :  { %v1500_v13 = vpop.xlane.xlu0 %1499 }
0x10c8   :  { %v1504_v18 = vmul.f32 0.03125, %v1500_v13 }
0x10ca   :  { %v1508_v20 = vsub.f32 %v1504_v18, %v1506_v15 }
0x10cb   :  { %v1503_v21 = vpop.xlane.xlu0 %1502 }
0x10cc   :  { %v1510_v55 = vmax.f32 %v1508_v20, 0.0  ;;  %v1505_v57 = vmul.f32 0.03125, %v1503_v21 }
0x10ce   :  { %v1512_v23 = vadd.f32 1e-05, %v1510_v55  ;;  %v1509_v58 = vsub.f32 %v1505_v57, %v1507_v22  ;;  %v1751_v22 = vld [vmem:[%s2849_s3 + $0x138] sm:$0xff]  ;;  %v2284_v55 = vmov 0.0   ;;  %v1748_v57 = vld [vmem:[%s2849_s3 + $0x120] sm:$0xff] }
0x10cf   :  { %2176 = vmatprep.subr.mxu1 %v2284_v55 }
0x10d0   :  { %2249 = vrsqrt.f32 %v1512_v23  ;;  %v1511_v60 = vmax.f32 %v1509_v58, 0.0 }
0x10d2   :  { %v1513_v24 = vadd.f32 1e-05, %v1511_v60 }
0x10d4   :  { %2251 = vrsqrt.f32 %v1513_v24 }
0x10dd   :  { %v2250_v3 = vpop.eup %2249 }
0x10de   :  { %v1518_v9 = vmul.f32 %v2250_v3, %v1486_v25 }
0x10e0   :  { %v1520_v2 = vmul.f32 %v1518_v9, %v1516_v1 }
0x10e1   :  { %v2252_v4 = vpop.eup %2251 }
0x10e2   :  { %v1519_v28 = vmul.f32 %v2252_v4, %v1486_v25  ;;  %v1522_v29 = vadd.f32 %v1520_v2, %v1487_v26 }
0x10e4   :  { %v1521_v30 = vmul.f32 %v1519_v28, %v1517_v27  ;;  %2154 = vmatprep.mubr.msk.f32.mxu1 %vm212_vm0, %v1522_v29  ;;  %v1728_v28 = vld [vmem:[%s2847_s1 + $0x6] ss:$0 sm:$0xff] }
0x10e6   :  { %v1523_v0 = vadd.f32 %v1521_v30, %v1487_v26  ;;  %v1727_v26 = vld [vmem:[%s2847_s1 + $0x5] ss:$0 sm:$0xff] }
0x10e8   :  { %2155 = vmatmul.mubr.msk.f32.vlgmr.msra.gmra.mxu1 %vm212_vm0, %v1523_v0  ;;  %v1752_v0 = vld [vmem:[%s2847_s1 + $0x7] ss:$0 sm:$0xff] }
0x10e9   :  { %2184 = vmatprep.mubr.msk.f32.mxu1 %vm2285_vm5, %v2284_v55  ;;  %2177 = vmatpush3.msra.mxu1 %v1751_v22 }
0x10ea   :  { %2178 = vmatprep.subr.mxu1 %v2284_v55 }
0x11a8   :  { %v2156_v40 = vpop.f32.mrf.mxu1 }
0x11a9   :  { %v1607_v41 = vadd.f32 %v2156_v40, %v1528_v39 }
0x11aa   :  { %v1601_v42 = vpop.f32.mrf.mxu1 }
0x11ab   :  { %v1613_v43 = vmul.f32 0.044715, %v1607_v41  ;;  %v1602_v44 = vadd.f32 %v1601_v42, %v1528_v39  ;;  %v1611_v17 = vmul.f32 0.5, %v1607_v41 }
0x11ad   :  { %v1615_v45 = vmul.f32 %v1613_v43, %v1607_v41  ;;  %v1612_v46 = vmul.f32 0.044715, %v1602_v44  ;;  %v1610_v63 = vmul.f32 0.5, %v1602_v44 }
0x11af   :  { %v1617_v47 = vmul.f32 %v1615_v45, %v1607_v41  ;;  %v1614_v48 = vmul.f32 %v1612_v46, %v1602_v44 }
0x11b1   :  { %v1619_v49 = vadd.f32 %v1617_v47, %v1607_v41  ;;  %v1616_v50 = vmul.f32 %v1614_v48, %v1602_v44 }
0x11b3   :  { %v1621_v51 = vmul.f32 0.7978846, %v1619_v49  ;;  %v1618_v52 = vadd.f32 %v1616_v50, %v1602_v44 }
0x11b5   :  { %2253 = vtanh.f32 %v1621_v51  ;;  %v1620_v53 = vmul.f32 0.7978846, %v1618_v52 }
0x11b7   :  { %2255 = vtanh.f32 %v1620_v53 }
0x11c2   :  { %v2254_v56 = vpop.eup %2253 }
0x11c3   :  { %v1625_v62 = vadd.f32 1.0, %v2254_v56 }
0x11c4   :  { %v2256_v61 = vpop.eup %2255 }
0x11c5   :  { %v1624_v16 = vadd.f32 1.0, %v2256_v61  ;;  %v1627_v10 = vmul.f32 %v1625_v62, %v1611_v17 }
0x11c7   :  { %v1626_v19 = vmul.f32 %v1624_v16, %v1610_v63 }
0x11c9   :  { %2173 = vmatprep.mubr.msk.f32.mxu0 %vm902_vm2, %v1626_v19 }
0x11ca   :  { %2174 = vmatmul.mubr.msk.f32.vlgmr.msra.gmra.mxu0 %vm902_vm2, %v1627_v10 }
0x128a   :  { %v2175_v5 = vpop.f32.mrf.mxu0 }
0x128b   :  { %v1718_v7 = vadd.f32 %v2175_v5, %v2750_v54  ;;  %v1750_v54 = vld [vmem:[%s2849_s3 + $0x130] sm:$0xff] }
0x128c   :  { %v1708_v8 = vpop.f32.mrf.mxu0  ;;  %2179 = vmatpush3.msra.mxu1 %v1750_v54 }
0x128d   :  { %v1721_v11 = vadd.f32 %v1719_v6, %v1718_v7  ;;  %v1717_v12 = vadd.f32 %v1708_v8, %v2753_v59  ;;  %v1749_v59 = vld [vmem:[%s2849_s3 + $0x128] sm:$0xff]  ;;  %2180 = vmatprep.subr.mxu1 %v2284_v55 }
0x128e   :  { %2181 = vmatpush3.msra.mxu1 %v1749_v59 }
0x128f   :  { %v1723_v13 = vrot.slane %v1721_v11, 7  ;;  %v1720_v14 = vadd.f32 %v1719_v6, %v1717_v12  ;;  %2182 = vmatprep.subr.mxu1 %v2284_v55 }
0x1290   :  { %2183 = vmatpush3.msra.mxu1 %v1748_v57 }
0x1291   :  { %v1726_v15 = vsel %vm1725_vm3, %v1720_v14, %v1723_v13 }
0x1292   :  { %v1730_v18 = vsel %vm1729_vm4, %v1726_v15, 0.0  ;;  %v1734_v20 = vmul.f32 %v1726_v15, %v1726_v15 }
0x1293   :  { %1731 = vadd.xlane.f32.xlu0 %v1730_v18 }
0x1294   :  { %v1735_v21 = vsel %vm1729_vm4, %v1734_v20, 0.0 }
0x1295   :  { %1736 = vadd.xlane.f32.xlu1 %v1735_v21 }
0x131c   :  { %v1732_v23 = vpop.xlane.xlu0 %1731 }
0x131d   :  { %v1733_v58 = vmul.f32 0.03125, %v1732_v23 }
0x131e   :  { %v1737_v60 = vpop.xlane.xlu1 %1736 }
0x131f   :  { %v1739_v24 = vmul.f32 %v1733_v58, %v1733_v58  ;;  %v1738_v25 = vmul.f32 0.03125, %v1737_v60  ;;  %v1744_v4 = vsub.f32 %v1726_v15, %v1733_v58 }
0x1321   :  { %v1740_v3 = vsub.f32 %v1738_v25, %v1739_v24 }
0x1323   :  { %v1741_v1 = vmax.f32 %v1740_v3, 0.0 }
0x1325   :  { %v1742_v9 = vadd.f32 1e-05, %v1741_v1 }
0x1327   :  { %2257 = vrsqrt.f32 %v1742_v9 }
0x1334   :  { %v2258_v2 = vpop.eup %2257 }
0x1335   :  { %v1745_v27 = vmul.f32 %v2258_v2, %v1727_v26 }
0x1337   :  { %v1746_v29 = vmul.f32 %v1745_v27, %v1744_v4 }
0x1339   :  { %v1747_v30 = vadd.f32 %v1746_v29, %v1728_v28 }
0x133b   :  { %2185 = vmatmul.mubr.msk.f32.vlgmr.msra.gmra.mxu1 %vm212_vm0, %v1747_v30 }
0x13fb   :  { %v1822_v31 = vpop.f32.mrf.mxu1 }
0x13fc   :  { %v1823_v32 = vadd.f32 %v1822_v31, %v1752_v0 }
0x13fd   :  { %v2186_v33 = vpop.f32.mrf.mxu1 }
0x13fe   :  { %1826 = vst [vmem:[#allocation2] sm:$0x3] %v1823_v32 }
0x13ff   :  { %2270 = shalt.err (!%p2267_p4)
}
0x1400   :  { %1836 = dma.vmem_to_hbm [thread:$0]  %s1834_s13, 32, %s2850_s4, [#allocation3]  }
0x1401   :  { %2279 = dma.done.wait [#allocation3], 32  }
0x1402   :  { %2280 = vsyncadd [#allocation3], 4294967264 }
0x1403   :  { %1840 = vsyncpa [#allocation3], 1 }

</bundles_post_ra>
